<compile_context>
chip_gen: v5e
topology: v5e:2x2
jax: 0.10.0
libtpu: 0.0.40
codegen_flags: <defaults>
</compile_context>

<pallas_src>
import functools
import math

import jax
import jax.numpy as jnp
from jax.experimental import pallas as pl
from jax.experimental.pallas import tpu as pltpu

NEG_INF = -1e9


def _pick_block_b(batch, rows_per_item, target_rows=256):
    """Batch rows per grid step: aim for >=target_rows MXU rows, keep >=2 grid steps."""
    bb = max(1, min(batch, target_rows // max(rows_per_item, 1)))
    if bb >= batch and batch > 1:
        bb = (batch + 1) // 2          # keep >=2 parallel steps for v7x's 2nd TensorCore
    while batch % bb:                  # bb must divide batch (bb=1 always works)
        bb -= 1
    return bb


# ---------------------------- fused decoder layer kernel ----------------------------

def _decoder_layer_kernel(x_ref, mem_ref, tm_ref, pad_ref,
                          sa_wqkv_ref, sa_bqkv_ref, sa_wo_ref, sa_bo_ref,
                          ca_wq_ref, ca_bq_ref, ca_wkv_ref, ca_bkv_ref,
                          ca_wo_ref, ca_bo_ref,
                          w1_ref, b1_ref, w2_ref, b2_ref, ln_ref,
                          o_ref, *, nhead, eps):
    f32 = jnp.float32
    bf16 = jnp.bfloat16
    Bb, T, D = x_ref.shape
    S = mem_ref.shape[1]
    dh = D // nhead
    scale = 1.0 / math.sqrt(dh)

    x = x_ref[...].reshape(Bb * T, D)          # (Bb*T, D) f32 residual stream
    mem = mem_ref[...].reshape(Bb * S, D)      # (Bb*S, D) bf16 at rest
    ln = ln_ref[...]                           # (6, D)  [g1, b1, g2, b2, g3, b3]

    def mm(a, w_ref, b_ref):
        # bf16 MXU matmul, f32 accumulation, f32 bias.
        return (jnp.dot(a.astype(bf16), w_ref[...], preferred_element_type=f32)
                + b_ref[...])

    def layer_norm(y, g, b):
        mu = jnp.mean(y, axis=-1, keepdims=True)
        var = jnp.mean((y - mu) ** 2, axis=-1, keepdims=True)
        return (y - mu) * jax.lax.rsqrt(var + eps) * g + b

    def split_heads(a):
        # (rows, D) -> (nhead, rows, dh); stack of lane slices, no lane-split reshape.
        return jnp.stack([a[:, h * dh:(h + 1) * dh] for h in range(nhead)], axis=0)

    def attend(q, k, v, mask):
        # q: (Tq, D), k/v: (Tk, D), mask: (Tq, Tk) additive or None -> (Tq, D) f32.
        qh = split_heads(q.astype(bf16))                       # (H, Tq, dh)
        kh = split_heads(k.astype(bf16))                       # (H, Tk, dh)
        vh = split_heads(v.astype(bf16))                       # (H, Tk, dh)
        s = jax.lax.dot_general(qh, kh, (((2,), (2,)), ((0,), (0,))),
                                preferred_element_type=f32) * scale   # (H, Tq, Tk)
        if mask is not None:
            s = s + mask
        s = s - jnp.max(s, axis=-1, keepdims=True)
        p = jnp.exp(s)
        p = p * pl.reciprocal(jnp.sum(p, axis=-1, keepdims=True), approx=True)
        ctx = jax.lax.dot_general(p.astype(bf16), vh, (((2,), (1,)), ((0,), (0,))),
                                  preferred_element_type=f32)          # (H, Tq, dh)
        # Re-assemble heads along the feature dim -> ONE out-projection matmul later.
        return jnp.concatenate([ctx[h] for h in range(nhead)], axis=-1)  # (Tq, D)

    def mha(q_all, k_all, v_all, Tq, Tk, wo_ref, bo_ref, masks):
        # q_all: (Bb*Tq, D); k_all/v_all: (Bb*Tk, D); masks: per-batch list or None.
        ctxs = []
        for b in range(Bb):                                    # Bb is small (<= ~4)
            q = q_all[b * Tq:(b + 1) * Tq]
            k = k_all[b * Tk:(b + 1) * Tk]
            v = v_all[b * Tk:(b + 1) * Tk]
            ctxs.append(attend(q, k, v, None if masks is None else masks[b]))
        ctx = ctxs[0] if Bb == 1 else jnp.concatenate(ctxs, axis=0)   # (Bb*Tq, D)
        # Single full-K output projection (MXU-friendly), weight bf16 at rest.
        return (jnp.dot(ctx.astype(bf16), wo_ref[...], preferred_element_type=f32)
                + bo_ref[...])

    # ----- self-attention (fused QKV projection, causal + key-padding mask) -----
    qkv = mm(x, sa_wqkv_ref, sa_bqkv_ref)                      # (Bb*T, 3D)
    tm = tm_ref[...]                                           # (T, T)
    masks = [tm + pad_ref[b] for b in range(Bb)]               # each (T, T)
    sa = mha(qkv[:, :D], qkv[:, D:2 * D], qkv[:, 2 * D:], T, T,
             sa_wo_ref, sa_bo_ref, masks)
    x1 = layer_norm(x + sa, ln[0:1, :], ln[1:2, :])

    # ----- cross-attention over image tokens (cross mask is all-zero: dropped) -----
    cq = mm(x1, ca_wq_ref, ca_bq_ref)                          # (Bb*T, D)
    kv = mm(mem, ca_wkv_ref, ca_bkv_ref)                       # (Bb*S, 2D)
    ca = mha(cq, kv[:, :D], kv[:, D:], T, S, ca_wo_ref, ca_bo_ref, None)
    x2 = layer_norm(x1 + ca, ln[2:3, :], ln[3:4, :])

    # ----- feed-forward (ReLU) -----
    hidden = jnp.maximum(mm(x2, w1_ref, b1_ref), 0.0)          # (Bb*T, dff)
    ff = mm(hidden, w2_ref, b2_ref)                            # (Bb*T, D)
    o_ref[...] = layer_norm(x2 + ff, ln[4:5, :], ln[5:6, :]).reshape(Bb, T, D)


def fused_decoder_layer(x, mem, tgt_mask, pad_add, lp, nhead, block_b):
    """x: (B,T,D) f32, mem: (B,S,D) bf16, tgt_mask: (T,T) additive, pad_add: (B,T)."""
    B, T, D = x.shape
    S = mem.shape[1]
    dff = lp["w1"].shape[1]

    def full(shape):
        return pl.BlockSpec(shape, lambda *_: (0,) * len(shape))

    return pl.pallas_call(
        functools.partial(_decoder_layer_kernel, nhead=nhead, eps=1e-5),
        out_shape=jax.ShapeDtypeStruct((B, T, D), jnp.float32),
        grid=(B // block_b,),
        in_specs=[
            pl.BlockSpec((block_b, T, D), lambda b: (b, 0, 0)),    # x (block of batches)
            pl.BlockSpec((block_b, S, D), lambda b: (b, 0, 0)),    # memory (bf16)
            full((T, T)),                                          # tgt_mask (shared)
            pl.BlockSpec((block_b, 1, T), lambda b: (b, 0, 0)),    # key-padding additive
            full((D, 3 * D)), full((1, 3 * D)),                    # fused QKV
            full((D, D)), full((1, D)),                            # self out-proj
            full((D, D)), full((1, D)),                            # cross Q
            full((D, 2 * D)), full((1, 2 * D)),                    # fused cross KV
            full((D, D)), full((1, D)),                            # cross out-proj
            full((D, dff)), full((1, dff)),                        # FFN w1
            full((dff, D)), full((1, D)),                          # FFN w2
            full((6, D)),                                          # LN params
        ],
        out_specs=pl.BlockSpec((block_b, T, D), lambda b: (b, 0, 0)),
        compiler_params=pltpu.CompilerParams(
            dimension_semantics=("parallel",),
            vmem_limit_bytes=48 * 1024 * 1024),
    )(x, mem, tgt_mask, pad_add.reshape(B, 1, T),
      lp["sa_wqkv"], lp["sa_bqkv"].reshape(1, -1),
      lp["sa_wo"], lp["sa_bo"].reshape(1, -1),
      lp["ca_wq"], lp["ca_bq"].reshape(1, -1),
      lp["ca_wkv"], lp["ca_bkv"].reshape(1, -1),
      lp["ca_wo"], lp["ca_bo"].reshape(1, -1),
      lp["w1"], lp["b1"].reshape(1, -1),
      lp["w2"], lp["b2"].reshape(1, -1),
      lp["ln"])


# ---------------------------- image stem kernel ----------------------------

def _stem_kernel(p_ref, w_ref, b_ref, g_ref, bt_ref, pe_ref, o_ref, *, eps):
    f32 = jnp.float32
    Bb, S, Cp = p_ref.shape
    D = w_ref.shape[1]
    y = (jnp.dot(p_ref[...].reshape(Bb * S, Cp), w_ref[...],
                 preferred_element_type=f32) + b_ref[...])
    mu = jnp.mean(y, axis=-1, keepdims=True)
    var = jnp.mean((y - mu) ** 2, axis=-1, keepdims=True)
    y = (y - mu) * jax.lax.rsqrt(var + eps) * g_ref[...] + bt_ref[...]
    o_ref[...] = y.reshape(Bb, S, D) + pe_ref[...]   # fold src PE add (dropout=identity)


def image_encoder(img, p, pe, emb_size, patch=4):
    """ConvNeXt patchify stem (Conv2d k=4 s=4 as a linear on 4x4 patches) + channel LN,
    fused with the decoder-src positional-encoding add. Output (B, S, D) f32."""
    # TODO(synk): the full ConvNeXt-Small backbone (depthwise 7x7 blocks, downsample
    # stages) is not ported; only the patchify stem is implemented here.
    B, C, H, W = img.shape
    Hp, Wp = H // patch, W // patch
    S = Hp * Wp
    Cp = C * patch * patch
    Cp_pad = ((Cp + 127) // 128) * 128            # lane-dense K for the stem matmul
    patches = img.reshape(B, C, Hp, patch, Wp, patch)
    patches = patches.transpose(0, 2, 4, 1, 3, 5).reshape(B, S, Cp)
    patches = patches.astype(jnp.bfloat16)
    w = p["stem_w"]                               # bf16 at rest, (Cp, D)
    if Cp_pad != Cp:
        patches = jnp.pad(patches, ((0, 0), (0, 0), (0, Cp_pad - Cp)))
        w = jnp.pad(w, ((0, Cp_pad - Cp), (0, 0)))

    bb = _pick_block_b(B, S)

    def full(shape):
        return pl.BlockSpec(shape, lambda *_: (0,) * len(shape))

    return pl.pallas_call(
        functools.partial(_stem_kernel, eps=1e-6),
        out_shape=jax.ShapeDtypeStruct((B, S, emb_size), jnp.float32),
        grid=(B // bb,),
        in_specs=[pl.BlockSpec((bb, S, Cp_pad), lambda b: (b, 0, 0)),
                  full((Cp_pad, emb_size)),
                  full((1, emb_size)),
                  full((1, emb_size)),
                  full((1, emb_size)),
                  full((S, emb_size))],
        out_specs=pl.BlockSpec((bb, S, emb_size), lambda b: (b, 0, 0)),
        compiler_params=pltpu.CompilerParams(dimension_semantics=("parallel",)),
    )(patches, w, p["stem_b"].reshape(1, -1), p["stem_ln_g"].reshape(1, -1),
      p["stem_ln_b"].reshape(1, -1), pe[:S])


# ---------------------------- tiled vocab projection ----------------------------

def _dense_kernel(x_ref, w_ref, b_ref, o_ref):
    o_ref[...] = (jnp.dot(x_ref[...].astype(jnp.bfloat16), w_ref[...],
                          preferred_element_type=jnp.float32) + b_ref[...])


def pallas_dense(x, w, b, tm=256, tn=256):
    """x: (M, K) f32, w: (K, N) bf16, b: (N,) f32 -> (M, N) f32.
    256-wide tiles fill the 256x256 MXU on v6e/v7x; clamped to full dims when small."""
    # TODO(synk): add a K grid axis + f32 VMEM accumulator for emb sizes too large
    # to keep the full K contraction resident.
    M, K = x.shape
    N = w.shape[1]
    tm = min(tm, M)
    tn = min(tn, N)
    return pl.pallas_call(
        _dense_kernel,
        out_shape=jax.ShapeDtypeStruct((M, N), jnp.float32),
        grid=(pl.cdiv(M, tm), pl.cdiv(N, tn)),
        in_specs=[pl.BlockSpec((tm, K), lambda i, j: (i, 0)),
                  pl.BlockSpec((K, tn), lambda i, j: (0, j)),
                  pl.BlockSpec((1, tn), lambda i, j: (0, j))],
        out_specs=pl.BlockSpec((tm, tn), lambda i, j: (i, j)),
        compiler_params=pltpu.CompilerParams(
            dimension_semantics=("parallel", "parallel"),
            vmem_limit_bytes=48 * 1024 * 1024),
    )(x, w.astype(jnp.bfloat16), b.reshape(1, N))


# ---------------------------- model glue ----------------------------

def positional_encoding_table(d_model, max_len=512):
    position = jnp.arange(max_len, dtype=jnp.float32)[:, None]
    div_term = jnp.exp(jnp.arange(0, d_model, 2, dtype=jnp.float32)
                       * (-math.log(10000.0) / d_model))
    pe = jnp.zeros((max_len, d_model), jnp.float32)
    pe = pe.at[:, 0::2].set(jnp.sin(position * div_term))
    pe = pe.at[:, 1::2].set(jnp.cos(position * div_term))
    return pe


def caption_model_forward(params, img, tgt_tokens, tgt_mask, tgt_padding_mask,
                          *, emb_size, nhead):
    pe = params["pe"]
    memory = image_encoder(img, params["encoder"], pe, emb_size)        # (B, S, D) f32
    memory = memory.astype(jnp.bfloat16)   # bf16 at rest for the cross-attn KV matmul

    B, T = tgt_tokens.shape
    dec = params["decoder"]
    # token embedding (gather stays in the XLA wrapper) + scale + positional encoding
    tgt = jnp.take(dec["embedding"], tgt_tokens, axis=0) * math.sqrt(emb_size)
    tgt = tgt + pe[:T]                                                  # (B, T, D)

    pad_add = jnp.where(tgt_padding_mask, NEG_INF, 0.0).astype(jnp.float32)  # (B, T)
    tgt_mask = tgt_mask.astype(jnp.float32)

    block_b = _pick_block_b(B, T)
    x = tgt
    for lp in dec["layers"]:
        x = fused_decoder_layer(x, memory, tgt_mask, pad_add, lp, nhead, block_b)

    V = dec["dense_w"].shape[1]
    logits = pallas_dense(x.reshape(B * T, emb_size), dec["dense_w"], dec["dense_b"])
    return logits.reshape(B, T, V).transpose(1, 0, 2)                   # (T, B, V)


# ---------------------------- deterministic parameter init ----------------------------

def _uniform(key, shape, scale=0.1, dtype=jnp.bfloat16):
    # Matmul weights are stored bf16 at rest (cast once here, not per forward call).
    return jax.random.uniform(key, shape, jnp.float32, -scale, scale).astype(dtype)


def init_params(key, *, emb_size, nhead, num_layers, vocab, dff, in_chans=3, patch=4):
    keys = jax.random.split(key, 3 + num_layers)
    encoder = {
        "stem_w": _uniform(keys[0], (in_chans * patch * patch, emb_size)),
        "stem_b": jnp.zeros((emb_size,), jnp.float32),
        "stem_ln_g": jnp.ones((emb_size,), jnp.float32),
        "stem_ln_b": jnp.zeros((emb_size,), jnp.float32),
    }

    ln_pack = jnp.concatenate(
        [jnp.ones((1, emb_size)), jnp.zeros((1, emb_size))] * 3, axis=0
    ).astype(jnp.float32)                                   # rows: g1,b1,g2,b2,g3,b3

    layers = []
    for l in range(num_layers):
        lk = jax.random.split(keys[3 + l], 7)
        layers.append({
            "sa_wqkv": _uniform(lk[0], (emb_size, 3 * emb_size)),   # fused Q|K|V
            "sa_bqkv": jnp.zeros((3 * emb_size,), jnp.float32),
            "sa_wo": _uniform(lk[1], (emb_size, emb_size)),
            "sa_bo": jnp.zeros((emb_size,), jnp.float32),
            "ca_wq": _uniform(lk[2], (emb_size, emb_size)),
            "ca_bq": jnp.zeros((emb_size,), jnp.float32),
            "ca_wkv": _uniform(lk[3], (emb_size, 2 * emb_size)),    # fused K|V
            "ca_bkv": jnp.zeros((2 * emb_size,), jnp.float32),
            "ca_wo": _uniform(lk[4], (emb_size, emb_size)),
            "ca_bo": jnp.zeros((emb_size,), jnp.float32),
            "w1": _uniform(lk[5], (emb_size, dff)),
            "b1": jnp.zeros((dff,), jnp.float32),
            "w2": _uniform(lk[6], (dff, emb_size)),
            "b2": jnp.zeros((emb_size,), jnp.float32),
            "ln": ln_pack,
        })

    decoder = {
        "embedding": _uniform(keys[1], (vocab, emb_size), dtype=jnp.float32),
        "layers": layers,
        "dense_w": _uniform(keys[2], (emb_size, vocab)),
        "dense_b": jnp.zeros((vocab,), jnp.float32),
    }
    return {"encoder": encoder, "decoder": decoder,
            "pe": positional_encoding_table(emb_size)}


if __name__ == "__main__":
    emb_size, nhead, num_layers, vocab, dff = 32, 4, 2, 64, 64
    B, C, Himg, Wimg, T = 2, 3, 16, 16, 8

    key = jax.random.PRNGKey(0)
    pkey, ikey, tkey = jax.random.split(key, 3)
    params = init_params(pkey, emb_size=emb_size, nhead=nhead,
                         num_layers=num_layers, vocab=vocab, dff=dff)

    img = jax.random.normal(ikey, (B, C, Himg, Wimg), jnp.float32)
    tgt_tokens = jax.random.randint(tkey, (B, T), 0, vocab)
    # causal (square subsequent) float mask like PyTorch's generate_square_subsequent_mask
    tgt_mask = jnp.where(jnp.triu(jnp.ones((T, T), dtype=bool), k=1),
                         NEG_INF, 0.0).astype(jnp.float32)
    # pad the last two positions of batch element 1
    tgt_padding_mask = jnp.zeros((B, T), dtype=bool).at[1, T - 2:].set(True)

    forward = jax.jit(functools.partial(caption_model_forward,
                                        emb_size=emb_size, nhead=nhead))
    out = forward(params, img, tgt_tokens, tgt_mask, tgt_padding_mask)
    out = jax.block_until_ready(out)
    assert out.shape == (T, B, vocab) and out.dtype == jnp.float32
    assert bool(jnp.all(jnp.isfinite(out)))
    print("KERNEL_OK")
</pallas_src>

<mosaic_0001>
module attributes {stable_mosaic.version = 11 : i64} {
  func.func @_dense_kernel(%arg0: i32, %arg1: i32, %arg2: memref<16x32xf32, #tpu.memory_space<vmem>>, %arg3: memref<32x64xbf16, #tpu.memory_space<vmem>>, %arg4: memref<1x64xf32, #tpu.memory_space<vmem>>, %arg5: memref<16x64xf32, #tpu.memory_space<vmem>>) attributes {dimension_semantics = [#tpu.dimension_semantics<parallel>, #tpu.dimension_semantics<parallel>], iteration_bounds = array<i64: 1, 1>, scalar_prefetch = 0 : i64, scratch_operands = 0 : i64, tpu.core_type = #tpu.core_type<tc>, window_params = [{transform_indices = @transform_0, window_bounds = array<i64: 16, 32>}, {transform_indices = @transform_1, window_bounds = array<i64: 32, 64>}, {transform_indices = @transform_2, window_bounds = array<i64: 1, 64>}, {transform_indices = @transform_3, window_bounds = array<i64: 16, 64>}]} {
    %c0 = arith.constant 0 : index
    %c0_0 = arith.constant 0 : index
    %0 = vector.load %arg2[%c0, %c0_0] : memref<16x32xf32, #tpu.memory_space<vmem>>, vector<16x32xf32>
    %1 = arith.truncf %0 : vector<16x32xf32> to vector<16x32xbf16>
    %c0_1 = arith.constant 0 : index
    %c0_2 = arith.constant 0 : index
    %2 = vector.load %arg3[%c0_1, %c0_2] : memref<32x64xbf16, #tpu.memory_space<vmem>>, vector<32x64xbf16>
    %cst = arith.constant dense<0.000000e+00> : vector<16x64xf32>
    %3 = tpu.matmul %1, %2, %cst {dimension_numbers = #tpu.dot_dimension_numbers<[1], [0], [0], [1], [0, 0, 1, 1], [], []>} : vector<16x32xbf16>, vector<32x64xbf16>, vector<16x64xf32> -> vector<16x64xf32>
    %c0_3 = arith.constant 0 : index
    %c0_4 = arith.constant 0 : index
    %4 = vector.load %arg4[%c0_3, %c0_4] : memref<1x64xf32, #tpu.memory_space<vmem>>, vector<1x64xf32>
    %5 = vector.broadcast %4 : vector<1x64xf32> to vector<16x64xf32>
    %6 = arith.addf %3, %5 : vector<16x64xf32>
    %c0_5 = arith.constant 0 : index
    %c0_6 = arith.constant 0 : index
    %7 = vector.load %arg5[%c0_5, %c0_6] : memref<16x64xf32, #tpu.memory_space<vmem>>, vector<16x64xf32>
    tpu.vector_store %arg5[%c0_5, %c0_6], %6 {strides = array<i32>} : memref<16x64xf32, #tpu.memory_space<vmem>>, vector<16x64xf32>,
    return
  }
  func.func @transform_0(%arg0: i32, %arg1: i32) -> (i32, i32) {
    %c0_i32 = arith.constant 0 : i32
    %c0_i32_0 = arith.constant 0 : i32
    return %arg0, %c0_i32 : i32, i32
  }
  func.func @transform_1(%arg0: i32, %arg1: i32) -> (i32, i32) {
    %c0_i32 = arith.constant 0 : i32
    %c0_i32_0 = arith.constant 0 : i32
    return %c0_i32, %arg1 : i32, i32
  }
  func.func @transform_2(%arg0: i32, %arg1: i32) -> (i32, i32) {
    %c0_i32 = arith.constant 0 : i32
    %c0_i32_0 = arith.constant 0 : i32
    return %c0_i32, %arg1 : i32, i32
  }
  func.func @transform_3(%arg0: i32, %arg1: i32) -> (i32, i32) {
    %c0_i32 = arith.constant 0 : i32
    return %arg0, %arg1 : i32, i32
  }
}

module attributes {stable_mosaic.version = 11 : i64} {
  func.func @_stem_kernel(%arg0: i32, %arg1: memref<1x16x128xbf16, #tpu.memory_space<vmem>>, %arg2: memref<128x32xbf16, #tpu.memory_space<vmem>>, %arg3: memref<1x32xf32, #tpu.memory_space<vmem>>, %arg4: memref<1x32xf32, #tpu.memory_space<vmem>>, %arg5: memref<1x32xf32, #tpu.memory_space<vmem>>, %arg6: memref<16x32xf32, #tpu.memory_space<vmem>>, %arg7: memref<1x16x32xf32, #tpu.memory_space<vmem>>) attributes {dimension_semantics = [#tpu.dimension_semantics<parallel>], iteration_bounds = array<i64: 2>, scalar_prefetch = 0 : i64, scratch_operands = 0 : i64, tpu.core_type = #tpu.core_type<tc>, window_params = [{transform_indices = @transform_0, window_bounds = array<i64: 1, 16, 128>}, {pipeline_mode = #tpu.pipeline_mode<synchronous>, transform_indices = @transform_1, window_bounds = array<i64: 128, 32>}, {pipeline_mode = #tpu.pipeline_mode<synchronous>, transform_indices = @transform_2, window_bounds = array<i64: 1, 32>}, {pipeline_mode = #tpu.pipeline_mode<synchronous>, transform_indices = @transform_3, window_bounds = array<i64: 1, 32>}, {pipeline_mode = #tpu.pipeline_mode<synchronous>, transform_indices = @transform_4, window_bounds = array<i64: 1, 32>}, {pipeline_mode = #tpu.pipeline_mode<synchronous>, transform_indices = @transform_5, window_bounds = array<i64: 16, 32>}, {transform_indices = @transform_6, window_bounds = array<i64: 1, 16, 32>}]} {
    %c0 = arith.constant 0 : index
    %c0_0 = arith.constant 0 : index
    %c0_1 = arith.constant 0 : index
    %0 = vector.load %arg1[%c0, %c0_0, %c0_1] : memref<1x16x128xbf16, #tpu.memory_space<vmem>>, vector<1x16x128xbf16>
    %1 = vector.shape_cast %0 : vector<1x16x128xbf16> to vector<16x128xbf16>
    %c0_2 = arith.constant 0 : index
    %c0_3 = arith.constant 0 : index
    %2 = vector.load %arg2[%c0_2, %c0_3] : memref<128x32xbf16, #tpu.memory_space<vmem>>, vector<128x32xbf16>
    %cst = arith.constant dense<0.000000e+00> : vector<16x32xf32>
    %3 = tpu.matmul %1, %2, %cst {dimension_numbers = #tpu.dot_dimension_numbers<[1], [0], [0], [1], [0, 0, 1, 1], [], []>} : vector<16x128xbf16>, vector<128x32xbf16>, vector<16x32xf32> -> vector<16x32xf32>
    %c0_4 = arith.constant 0 : index
    %c0_5 = arith.constant 0 : index
    %4 = vector.load %arg3[%c0_4, %c0_5] : memref<1x32xf32, #tpu.memory_space<vmem>>, vector<1x32xf32>
    %5 = vector.broadcast %4 : vector<1x32xf32> to vector<16x32xf32>
    %6 = arith.addf %3, %5 : vector<16x32xf32>
    %cst_6 = arith.constant dense<0.000000e+00> : vector<16xf32>
    %7 = vector.multi_reduction <add>, %6, %cst_6 [1] : vector<16x32xf32> to vector<16xf32>
    %8 = vector.shape_cast %7 : vector<16xf32> to vector<16x1xf32>
    %cst_7 = arith.constant 3.200000e+01 : f32
    %9 = vector.broadcast %cst_7 : f32 to vector<16x1xf32>
    %10 = arith.divf %8, %9 : vector<16x1xf32>
    %11 = vector.broadcast %10 : vector<16x1xf32> to vector<16x32xf32>
    %12 = arith.subf %6, %11 : vector<16x32xf32>
    %13 = arith.mulf %12, %12 : vector<16x32xf32>
    %cst_8 = arith.constant dense<0.000000e+00> : vector<16xf32>
    %14 = vector.multi_reduction <add>, %13, %cst_8 [1] : vector<16x32xf32> to vector<16xf32>
    %15 = vector.shape_cast %14 : vector<16xf32> to vector<16x1xf32>
    %cst_9 = arith.constant 3.200000e+01 : f32
    %16 = vector.broadcast %cst_9 : f32 to vector<16x1xf32>
    %17 = arith.divf %15, %16 : vector<16x1xf32>
    %18 = vector.broadcast %10 : vector<16x1xf32> to vector<16x32xf32>
    %19 = arith.subf %6, %18 : vector<16x32xf32>
    %cst_10 = arith.constant 9.99999997E-7 : f32
    %20 = vector.broadcast %cst_10 : f32 to vector<16x1xf32>
    %21 = arith.addf %17, %20 : vector<16x1xf32>
    %22 = math.rsqrt %21 : vector<16x1xf32>
    %23 = vector.broadcast %22 : vector<16x1xf32> to vector<16x32xf32>
    %24 = arith.mulf %19, %23 : vector<16x32xf32>
    %c0_11 = arith.constant 0 : index
    %c0_12 = arith.constant 0 : index
    %25 = vector.load %arg4[%c0_11, %c0_12] : memref<1x32xf32, #tpu.memory_space<vmem>>, vector<1x32xf32>
    %26 = vector.broadcast %25 : vector<1x32xf32> to vector<16x32xf32>
    %27 = arith.mulf %24, %26 : vector<16x32xf32>
    %c0_13 = arith.constant 0 : index
    %c0_14 = arith.constant 0 : index
    %28 = vector.load %arg5[%c0_13, %c0_14] : memref<1x32xf32, #tpu.memory_space<vmem>>, vector<1x32xf32>
    %29 = vector.broadcast %28 : vector<1x32xf32> to vector<16x32xf32>
    %30 = arith.addf %27, %29 : vector<16x32xf32>
    %31 = vector.shape_cast %30 : vector<16x32xf32> to vector<1x16x32xf32>
    %c0_15 = arith.constant 0 : index
    %c0_16 = arith.constant 0 : index
    %32 = vector.load %arg6[%c0_15, %c0_16] : memref<16x32xf32, #tpu.memory_space<vmem>>, vector<16x32xf32>
    %33 = vector.shape_cast %32 : vector<16x32xf32> to vector<1x16x32xf32>
    %34 = arith.addf %31, %33 : vector<1x16x32xf32>
    %c0_17 = arith.constant 0 : index
    %c0_18 = arith.constant 0 : index
    %c0_19 = arith.constant 0 : index
    %35 = vector.load %arg7[%c0_17, %c0_18, %c0_19] : memref<1x16x32xf32, #tpu.memory_space<vmem>>, vector<1x16x32xf32>
    tpu.vector_store %arg7[%c0_17, %c0_18, %c0_19], %34 {strides = array<i32>} : memref<1x16x32xf32, #tpu.memory_space<vmem>>, vector<1x16x32xf32>,
    return
  }
  func.func @transform_0(%arg0: i32) -> (i32, i32, i32) {
    %c0_i32 = arith.constant 0 : i32
    %c0_i32_0 = arith.constant 0 : i32
    %c0_i32_1 = arith.constant 0 : i32
    return %arg0, %c0_i32, %c0_i32_0 : i32, i32, i32
  }
  func.func @transform_1(%arg0: i32) -> (i32, i32) {
    %c0_i32 = arith.constant 0 : i32
    %c0_i32_0 = arith.constant 0 : i32
    %c0_i32_1 = arith.constant 0 : i32
    return %c0_i32, %c0_i32_0 : i32, i32
  }
  func.func @transform_2(%arg0: i32) -> (i32, i32) {
    %c0_i32 = arith.constant 0 : i32
    %c0_i32_0 = arith.constant 0 : i32
    %c0_i32_1 = arith.constant 0 : i32
    return %c0_i32, %c0_i32_0 : i32, i32
  }
  func.func @transform_3(%arg0: i32) -> (i32, i32) {
    %c0_i32 = arith.constant 0 : i32
    %c0_i32_0 = arith.constant 0 : i32
    %c0_i32_1 = arith.constant 0 : i32
    return %c0_i32, %c0_i32_0 : i32, i32
  }
  func.func @transform_4(%arg0: i32) -> (i32, i32) {
    %c0_i32 = arith.constant 0 : i32
    %c0_i32_0 = arith.constant 0 : i32
    %c0_i32_1 = arith.constant 0 : i32
    return %c0_i32, %c0_i32_0 : i32, i32
  }
  func.func @transform_5(%arg0: i32) -> (i32, i32) {
    %c0_i32 = arith.constant 0 : i32
    %c0_i32_0 = arith.constant 0 : i32
    %c0_i32_1 = arith.constant 0 : i32
    return %c0_i32, %c0_i32_0 : i32, i32
  }
  func.func @transform_6(%arg0: i32) -> (i32, i32, i32) {
    %c0_i32 = arith.constant 0 : i32
    %c0_i32_0 = arith.constant 0 : i32
    %c0_i32_1 = arith.constant 0 : i32
    return %arg0, %c0_i32, %c0_i32_0 : i32, i32, i32
  }
}

module attributes {stable_mosaic.version = 11 : i64} {
  func.func @_decoder_layer_kernel(%arg0: i32, %arg1: memref<1x8x32xf32, #tpu.memory_space<vmem>>, %arg2: memref<1x16x32xbf16, #tpu.memory_space<vmem>>, %arg3: memref<8x8xf32, #tpu.memory_space<vmem>>, %arg4: memref<1x1x8xf32, #tpu.memory_space<vmem>>, %arg5: memref<32x96xbf16, #tpu.memory_space<vmem>>, %arg6: memref<1x96xf32, #tpu.memory_space<vmem>>, %arg7: memref<32x32xbf16, #tpu.memory_space<vmem>>, %arg8: memref<1x32xf32, #tpu.memory_space<vmem>>, %arg9: memref<32x32xbf16, #tpu.memory_space<vmem>>, %arg10: memref<1x32xf32, #tpu.memory_space<vmem>>, %arg11: memref<32x64xbf16, #tpu.memory_space<vmem>>, %arg12: memref<1x64xf32, #tpu.memory_space<vmem>>, %arg13: memref<32x32xbf16, #tpu.memory_space<vmem>>, %arg14: memref<1x32xf32, #tpu.memory_space<vmem>>, %arg15: memref<32x64xbf16, #tpu.memory_space<vmem>>, %arg16: memref<1x64xf32, #tpu.memory_space<vmem>>, %arg17: memref<64x32xbf16, #tpu.memory_space<vmem>>, %arg18: memref<1x32xf32, #tpu.memory_space<vmem>>, %arg19: memref<6x32xf32, #tpu.memory_space<vmem>>, %arg20: memref<1x8x32xf32, #tpu.memory_space<vmem>>) attributes {dimension_semantics = [#tpu.dimension_semantics<parallel>], iteration_bounds = array<i64: 2>, scalar_prefetch = 0 : i64, scratch_operands = 0 : i64, tpu.core_type = #tpu.core_type<tc>, window_params = [{transform_indices = @transform_0, window_bounds = array<i64: 1, 8, 32>}, {transform_indices = @transform_1, window_bounds = array<i64: 1, 16, 32>}, {pipeline_mode = #tpu.pipeline_mode<synchronous>, transform_indices = @transform_2, window_bounds = array<i64: 8, 8>}, {transform_indices = @transform_3, window_bounds = array<i64: 1, 1, 8>}, {pipeline_mode = #tpu.pipeline_mode<synchronous>, transform_indices = @transform_4, window_bounds = array<i64: 32, 96>}, {pipeline_mode = #tpu.pipeline_mode<synchronous>, transform_indices = @transform_5, window_bounds = array<i64: 1, 96>}, {pipeline_mode = #tpu.pipeline_mode<synchronous>, transform_indices = @transform_6, window_bounds = array<i64: 32, 32>}, {pipeline_mode = #tpu.pipeline_mode<synchronous>, transform_indices = @transform_7, window_bounds = array<i64: 1, 32>}, {pipeline_mode = #tpu.pipeline_mode<synchronous>, transform_indices = @transform_8, window_bounds = array<i64: 32, 32>}, {pipeline_mode = #tpu.pipeline_mode<synchronous>, transform_indices = @transform_9, window_bounds = array<i64: 1, 32>}, {pipeline_mode = #tpu.pipeline_mode<synchronous>, transform_indices = @transform_10, window_bounds = array<i64: 32, 64>}, {pipeline_mode = #tpu.pipeline_mode<synchronous>, transform_indices = @transform_11, window_bounds = array<i64: 1, 64>}, {pipeline_mode = #tpu.pipeline_mode<synchronous>, transform_indices = @transform_12, window_bounds = array<i64: 32, 32>}, {pipeline_mode = #tpu.pipeline_mode<synchronous>, transform_indices = @transform_13, window_bounds = array<i64: 1, 32>}, {pipeline_mode = #tpu.pipeline_mode<synchronous>, transform_indices = @transform_14, window_bounds = array<i64: 32, 64>}, {pipeline_mode = #tpu.pipeline_mode<synchronous>, transform_indices = @transform_15, window_bounds = array<i64: 1, 64>}, {pipeline_mode = #tpu.pipeline_mode<synchronous>, transform_indices = @transform_16, window_bounds = array<i64: 64, 32>}, {pipeline_mode = #tpu.pipeline_mode<synchronous>, transform_indices = @transform_17, window_bounds = array<i64: 1, 32>}, {pipeline_mode = #tpu.pipeline_mode<synchronous>, transform_indices = @transform_18, window_bounds = array<i64: 6, 32>}, {transform_indices = @transform_19, window_bounds = array<i64: 1, 8, 32>}]} {
    %c0 = arith.constant 0 : index
    %c0_0 = arith.constant 0 : index
    %c0_1 = arith.constant 0 : index
    %0 = vector.load %arg1[%c0, %c0_0, %c0_1] : memref<1x8x32xf32, #tpu.memory_space<vmem>>, vector<1x8x32xf32>
    %1 = vector.shape_cast %0 : vector<1x8x32xf32> to vector<8x32xf32>
    %c0_2 = arith.constant 0 : index
    %c0_3 = arith.constant 0 : index
    %c0_4 = arith.constant 0 : index
    %2 = vector.load %arg2[%c0_2, %c0_3, %c0_4] : memref<1x16x32xbf16, #tpu.memory_space<vmem>>, vector<1x16x32xbf16>
    %3 = vector.shape_cast %2 : vector<1x16x32xbf16> to vector<16x32xbf16>
    %c0_5 = arith.constant 0 : index
    %c0_6 = arith.constant 0 : index
    %4 = vector.load %arg19[%c0_5, %c0_6] : memref<6x32xf32, #tpu.memory_space<vmem>>, vector<6x32xf32>
    %5 = arith.truncf %1 : vector<8x32xf32> to vector<8x32xbf16>
    %c0_7 = arith.constant 0 : index
    %c0_8 = arith.constant 0 : index
    %6 = vector.load %arg5[%c0_7, %c0_8] : memref<32x96xbf16, #tpu.memory_space<vmem>>, vector<32x96xbf16>
    %cst = arith.constant dense<0.000000e+00> : vector<8x96xf32>
    %7 = tpu.matmul %5, %6, %cst {dimension_numbers = #tpu.dot_dimension_numbers<[1], [0], [0], [1], [0, 0, 1, 1], [], []>} : vector<8x32xbf16>, vector<32x96xbf16>, vector<8x96xf32> -> vector<8x96xf32>
    %c0_9 = arith.constant 0 : index
    %c0_10 = arith.constant 0 : index
    %8 = vector.load %arg6[%c0_9, %c0_10] : memref<1x96xf32, #tpu.memory_space<vmem>>, vector<1x96xf32>
    %9 = vector.broadcast %8 : vector<1x96xf32> to vector<8x96xf32>
    %10 = arith.addf %7, %9 : vector<8x96xf32>
    %c0_11 = arith.constant 0 : index
    %c0_12 = arith.constant 0 : index
    %11 = vector.load %arg3[%c0_11, %c0_12] : memref<8x8xf32, #tpu.memory_space<vmem>>, vector<8x8xf32>
    %c0_13 = arith.constant 0 : index
    %c0_14 = arith.constant 0 : index
    %c0_15 = arith.constant 0 : index
    %12 = vector.load %arg4[%c0_13, %c0_14, %c0_15] : memref<1x1x8xf32, #tpu.memory_space<vmem>>, vector<1x1x8xf32>
    %13 = vector.shape_cast %12 : vector<1x1x8xf32> to vector<1x8xf32>
    %14 = vector.broadcast %13 : vector<1x8xf32> to vector<8x8xf32>
    %15 = arith.addf %11, %14 : vector<8x8xf32>
    %16 = vector.extract_strided_slice %10 {offsets = [0, 0], sizes = [8, 32], strides = [1, 1]} : vector<8x96xf32> to vector<8x32xf32>
    %17 = vector.extract_strided_slice %10 {offsets = [0, 32], sizes = [8, 32], strides = [1, 1]} : vector<8x96xf32> to vector<8x32xf32>
    %18 = vector.extract_strided_slice %10 {offsets = [0, 64], sizes = [8, 32], strides = [1, 1]} : vector<8x96xf32> to vector<8x32xf32>
    %19 = arith.truncf %16 : vector<8x32xf32> to vector<8x32xbf16>
    %20 = vector.extract_strided_slice %19 {offsets = [0, 0], sizes = [8, 8], strides = [1, 1]} : vector<8x32xbf16> to vector<8x8xbf16>
    %21 = vector.extract_strided_slice %19 {offsets = [0, 8], sizes = [8, 8], strides = [1, 1]} : vector<8x32xbf16> to vector<8x8xbf16>
    %22 = vector.extract_strided_slice %19 {offsets = [0, 16], sizes = [8, 8], strides = [1, 1]} : vector<8x32xbf16> to vector<8x8xbf16>
    %23 = vector.extract_strided_slice %19 {offsets = [0, 24], sizes = [8, 8], strides = [1, 1]} : vector<8x32xbf16> to vector<8x8xbf16>
    %24 = vector.shape_cast %20 : vector<8x8xbf16> to vector<1x8x8xbf16>
    %25 = vector.shape_cast %21 : vector<8x8xbf16> to vector<1x8x8xbf16>
    %26 = vector.shape_cast %22 : vector<8x8xbf16> to vector<1x8x8xbf16>
    %27 = vector.shape_cast %23 : vector<8x8xbf16> to vector<1x8x8xbf16>
    %28 = tpu.concatenate %24, %25, %26, %27 in 0 : vector<1x8x8xbf16>, vector<1x8x8xbf16>, vector<1x8x8xbf16>, vector<1x8x8xbf16> -> vector<4x8x8xbf16>
    %29 = arith.truncf %17 : vector<8x32xf32> to vector<8x32xbf16>
    %30 = vector.extract_strided_slice %29 {offsets = [0, 0], sizes = [8, 8], strides = [1, 1]} : vector<8x32xbf16> to vector<8x8xbf16>
    %31 = vector.extract_strided_slice %29 {offsets = [0, 8], sizes = [8, 8], strides = [1, 1]} : vector<8x32xbf16> to vector<8x8xbf16>
    %32 = vector.extract_strided_slice %29 {offsets = [0, 16], sizes = [8, 8], strides = [1, 1]} : vector<8x32xbf16> to vector<8x8xbf16>
    %33 = vector.extract_strided_slice %29 {offsets = [0, 24], sizes = [8, 8], strides = [1, 1]} : vector<8x32xbf16> to vector<8x8xbf16>
    %34 = vector.shape_cast %30 : vector<8x8xbf16> to vector<1x8x8xbf16>
    %35 = vector.shape_cast %31 : vector<8x8xbf16> to vector<1x8x8xbf16>
    %36 = vector.shape_cast %32 : vector<8x8xbf16> to vector<1x8x8xbf16>
    %37 = vector.shape_cast %33 : vector<8x8xbf16> to vector<1x8x8xbf16>
    %38 = tpu.concatenate %34, %35, %36, %37 in 0 : vector<1x8x8xbf16>, vector<1x8x8xbf16>, vector<1x8x8xbf16>, vector<1x8x8xbf16> -> vector<4x8x8xbf16>
    %39 = arith.truncf %18 : vector<8x32xf32> to vector<8x32xbf16>
    %40 = vector.extract_strided_slice %39 {offsets = [0, 0], sizes = [8, 8], strides = [1, 1]} : vector<8x32xbf16> to vector<8x8xbf16>
    %41 = vector.extract_strided_slice %39 {offsets = [0, 8], sizes = [8, 8], strides = [1, 1]} : vector<8x32xbf16> to vector<8x8xbf16>
    %42 = vector.extract_strided_slice %39 {offsets = [0, 16], sizes = [8, 8], strides = [1, 1]} : vector<8x32xbf16> to vector<8x8xbf16>
    %43 = vector.extract_strided_slice %39 {offsets = [0, 24], sizes = [8, 8], strides = [1, 1]} : vector<8x32xbf16> to vector<8x8xbf16>
    %44 = vector.shape_cast %40 : vector<8x8xbf16> to vector<1x8x8xbf16>
    %45 = vector.shape_cast %41 : vector<8x8xbf16> to vector<1x8x8xbf16>
    %46 = vector.shape_cast %42 : vector<8x8xbf16> to vector<1x8x8xbf16>
    %47 = vector.shape_cast %43 : vector<8x8xbf16> to vector<1x8x8xbf16>
    %48 = tpu.concatenate %44, %45, %46, %47 in 0 : vector<1x8x8xbf16>, vector<1x8x8xbf16>, vector<1x8x8xbf16>, vector<1x8x8xbf16> -> vector<4x8x8xbf16>
    %cst_16 = arith.constant dense<0.000000e+00> : vector<4x8x8xf32>
    %49 = tpu.matmul %28, %38, %cst_16 {dimension_numbers = #tpu.dot_dimension_numbers<[2], [2], [1], [1], [0, 0, 0, 1, 1, 1], [0], [0]>} : vector<4x8x8xbf16>, vector<4x8x8xbf16>, vector<4x8x8xf32> -> vector<4x8x8xf32>
    %cst_17 = arith.constant 0.353553385 : f32
    %50 = vector.broadcast %cst_17 : f32 to vector<4x8x8xf32>
    %51 = arith.mulf %49, %50 : vector<4x8x8xf32>
    %52 = vector.shape_cast %15 : vector<8x8xf32> to vector<1x8x8xf32>
    %53 = vector.broadcast %52 : vector<1x8x8xf32> to vector<4x8x8xf32>
    %54 = arith.addf %51, %53 : vector<4x8x8xf32>
    %cst_18 = arith.constant dense<0xFF800000> : vector<4x8xf32>
    %55 = vector.multi_reduction <maximumf>, %54, %cst_18 [2] : vector<4x8x8xf32> to vector<4x8xf32>
    %56 = vector.shape_cast %55 : vector<4x8xf32> to vector<4x8x1xf32>
    %57 = vector.broadcast %56 : vector<4x8x1xf32> to vector<4x8x8xf32>
    %58 = arith.subf %54, %57 : vector<4x8x8xf32>
    %59 = math.exp %58 : vector<4x8x8xf32>
    %cst_19 = arith.constant dense<0.000000e+00> : vector<4x8xf32>
    %60 = vector.multi_reduction <add>, %59, %cst_19 [2] : vector<4x8x8xf32> to vector<4x8xf32>
    %61 = vector.shape_cast %60 : vector<4x8xf32> to vector<4x8x1xf32>
    %62 = tpu.reciprocal %61 {approx = true} : vector<4x8x1xf32> -> vector<4x8x1xf32>
    %63 = vector.broadcast %62 : vector<4x8x1xf32> to vector<4x8x8xf32>
    %64 = arith.mulf %59, %63 : vector<4x8x8xf32>
    %65 = arith.truncf %64 : vector<4x8x8xf32> to vector<4x8x8xbf16>
    %cst_20 = arith.constant dense<0.000000e+00> : vector<4x8x8xf32>
    %66 = tpu.matmul %65, %48, %cst_20 {dimension_numbers = #tpu.dot_dimension_numbers<[2], [1], [1], [2], [0, 0, 0, 1, 1, 2], [0], [0]>} : vector<4x8x8xbf16>, vector<4x8x8xbf16>, vector<4x8x8xf32> -> vector<4x8x8xf32>
    %67 = vector.extract_strided_slice %66 {offsets = [0, 0, 0], sizes = [1, 8, 8], strides = [1, 1, 1]} : vector<4x8x8xf32> to vector<1x8x8xf32>
    %68 = vector.shape_cast %67 : vector<1x8x8xf32> to vector<8x8xf32>
    %69 = vector.extract_strided_slice %66 {offsets = [1, 0, 0], sizes = [1, 8, 8], strides = [1, 1, 1]} : vector<4x8x8xf32> to vector<1x8x8xf32>
    %70 = vector.shape_cast %69 : vector<1x8x8xf32> to vector<8x8xf32>
    %71 = vector.extract_strided_slice %66 {offsets = [2, 0, 0], sizes = [1, 8, 8], strides = [1, 1, 1]} : vector<4x8x8xf32> to vector<1x8x8xf32>
    %72 = vector.shape_cast %71 : vector<1x8x8xf32> to vector<8x8xf32>
    %73 = vector.extract_strided_slice %66 {offsets = [3, 0, 0], sizes = [1, 8, 8], strides = [1, 1, 1]} : vector<4x8x8xf32> to vector<1x8x8xf32>
    %74 = vector.shape_cast %73 : vector<1x8x8xf32> to vector<8x8xf32>
    %75 = tpu.concatenate %68, %70, %72, %74 in 1 : vector<8x8xf32>, vector<8x8xf32>, vector<8x8xf32>, vector<8x8xf32> -> vector<8x32xf32>
    %76 = arith.truncf %75 : vector<8x32xf32> to vector<8x32xbf16>
    %c0_21 = arith.constant 0 : index
    %c0_22 = arith.constant 0 : index
    %77 = vector.load %arg7[%c0_21, %c0_22] : memref<32x32xbf16, #tpu.memory_space<vmem>>, vector<32x32xbf16>
    %cst_23 = arith.constant dense<0.000000e+00> : vector<8x32xf32>
    %78 = tpu.matmul %76, %77, %cst_23 {dimension_numbers = #tpu.dot_dimension_numbers<[1], [0], [0], [1], [0, 0, 1, 1], [], []>} : vector<8x32xbf16>, vector<32x32xbf16>, vector<8x32xf32> -> vector<8x32xf32>
    %c0_24 = arith.constant 0 : index
    %c0_25 = arith.constant 0 : index
    %79 = vector.load %arg8[%c0_24, %c0_25] : memref<1x32xf32, #tpu.memory_space<vmem>>, vector<1x32xf32>
    %80 = vector.broadcast %79 : vector<1x32xf32> to vector<8x32xf32>
    %81 = arith.addf %78, %80 : vector<8x32xf32>
    %82 = arith.addf %1, %81 : vector<8x32xf32>
    %83 = vector.extract_strided_slice %4 {offsets = [0, 0], sizes = [1, 32], strides = [1, 1]} : vector<6x32xf32> to vector<1x32xf32>
    %84 = vector.extract_strided_slice %4 {offsets = [1, 0], sizes = [1, 32], strides = [1, 1]} : vector<6x32xf32> to vector<1x32xf32>
    %cst_26 = arith.constant dense<0.000000e+00> : vector<8xf32>
    %85 = vector.multi_reduction <add>, %82, %cst_26 [1] : vector<8x32xf32> to vector<8xf32>
    %86 = vector.shape_cast %85 : vector<8xf32> to vector<8x1xf32>
    %cst_27 = arith.constant 3.200000e+01 : f32
    %87 = vector.broadcast %cst_27 : f32 to vector<8x1xf32>
    %88 = arith.divf %86, %87 : vector<8x1xf32>
    %89 = vector.broadcast %88 : vector<8x1xf32> to vector<8x32xf32>
    %90 = arith.subf %82, %89 : vector<8x32xf32>
    %91 = arith.mulf %90, %90 : vector<8x32xf32>
    %cst_28 = arith.constant dense<0.000000e+00> : vector<8xf32>
    %92 = vector.multi_reduction <add>, %91, %cst_28 [1] : vector<8x32xf32> to vector<8xf32>
    %93 = vector.shape_cast %92 : vector<8xf32> to vector<8x1xf32>
    %cst_29 = arith.constant 3.200000e+01 : f32
    %94 = vector.broadcast %cst_29 : f32 to vector<8x1xf32>
    %95 = arith.divf %93, %94 : vector<8x1xf32>
    %96 = vector.broadcast %88 : vector<8x1xf32> to vector<8x32xf32>
    %97 = arith.subf %82, %96 : vector<8x32xf32>
    %cst_30 = arith.constant 9.99999974E-6 : f32
    %98 = vector.broadcast %cst_30 : f32 to vector<8x1xf32>
    %99 = arith.addf %95, %98 : vector<8x1xf32>
    %100 = math.rsqrt %99 : vector<8x1xf32>
    %101 = vector.broadcast %100 : vector<8x1xf32> to vector<8x32xf32>
    %102 = arith.mulf %97, %101 : vector<8x32xf32>
    %103 = vector.broadcast %83 : vector<1x32xf32> to vector<8x32xf32>
    %104 = arith.mulf %102, %103 : vector<8x32xf32>
    %105 = vector.broadcast %84 : vector<1x32xf32> to vector<8x32xf32>
    %106 = arith.addf %104, %105 : vector<8x32xf32>
    %107 = arith.truncf %106 : vector<8x32xf32> to vector<8x32xbf16>
    %c0_31 = arith.constant 0 : index
    %c0_32 = arith.constant 0 : index
    %108 = vector.load %arg9[%c0_31, %c0_32] : memref<32x32xbf16, #tpu.memory_space<vmem>>, vector<32x32xbf16>
    %cst_33 = arith.constant dense<0.000000e+00> : vector<8x32xf32>
    %109 = tpu.matmul %107, %108, %cst_33 {dimension_numbers = #tpu.dot_dimension_numbers<[1], [0], [0], [1], [0, 0, 1, 1], [], []>} : vector<8x32xbf16>, vector<32x32xbf16>, vector<8x32xf32> -> vector<8x32xf32>
    %c0_34 = arith.constant 0 : index
    %c0_35 = arith.constant 0 : index
    %110 = vector.load %arg10[%c0_34, %c0_35] : memref<1x32xf32, #tpu.memory_space<vmem>>, vector<1x32xf32>
    %111 = vector.broadcast %110 : vector<1x32xf32> to vector<8x32xf32>
    %112 = arith.addf %109, %111 : vector<8x32xf32>
    %c0_36 = arith.constant 0 : index
    %c0_37 = arith.constant 0 : index
    %113 = vector.load %arg11[%c0_36, %c0_37] : memref<32x64xbf16, #tpu.memory_space<vmem>>, vector<32x64xbf16>
    %cst_38 = arith.constant dense<0.000000e+00> : vector<16x64xf32>
    %114 = tpu.matmul %3, %113, %cst_38 {dimension_numbers = #tpu.dot_dimension_numbers<[1], [0], [0], [1], [0, 0, 1, 1], [], []>} : vector<16x32xbf16>, vector<32x64xbf16>, vector<16x64xf32> -> vector<16x64xf32>
    %c0_39 = arith.constant 0 : index
    %c0_40 = arith.constant 0 : index
    %115 = vector.load %arg12[%c0_39, %c0_40] : memref<1x64xf32, #tpu.memory_space<vmem>>, vector<1x64xf32>
    %116 = vector.broadcast %115 : vector<1x64xf32> to vector<16x64xf32>
    %117 = arith.addf %114, %116 : vector<16x64xf32>
    %118 = vector.extract_strided_slice %117 {offsets = [0, 0], sizes = [16, 32], strides = [1, 1]} : vector<16x64xf32> to vector<16x32xf32>
    %119 = vector.extract_strided_slice %117 {offsets = [0, 32], sizes = [16, 32], strides = [1, 1]} : vector<16x64xf32> to vector<16x32xf32>
    %120 = arith.truncf %112 : vector<8x32xf32> to vector<8x32xbf16>
    %121 = vector.extract_strided_slice %120 {offsets = [0, 0], sizes = [8, 8], strides = [1, 1]} : vector<8x32xbf16> to vector<8x8xbf16>
    %122 = vector.extract_strided_slice %120 {offsets = [0, 8], sizes = [8, 8], strides = [1, 1]} : vector<8x32xbf16> to vector<8x8xbf16>
    %123 = vector.extract_strided_slice %120 {offsets = [0, 16], sizes = [8, 8], strides = [1, 1]} : vector<8x32xbf16> to vector<8x8xbf16>
    %124 = vector.extract_strided_slice %120 {offsets = [0, 24], sizes = [8, 8], strides = [1, 1]} : vector<8x32xbf16> to vector<8x8xbf16>
    %125 = vector.shape_cast %121 : vector<8x8xbf16> to vector<1x8x8xbf16>
    %126 = vector.shape_cast %122 : vector<8x8xbf16> to vector<1x8x8xbf16>
    %127 = vector.shape_cast %123 : vector<8x8xbf16> to vector<1x8x8xbf16>
    %128 = vector.shape_cast %124 : vector<8x8xbf16> to vector<1x8x8xbf16>
    %129 = tpu.concatenate %125, %126, %127, %128 in 0 : vector<1x8x8xbf16>, vector<1x8x8xbf16>, vector<1x8x8xbf16>, vector<1x8x8xbf16> -> vector<4x8x8xbf16>
    %130 = arith.truncf %118 : vector<16x32xf32> to vector<16x32xbf16>
    %131 = vector.extract_strided_slice %130 {offsets = [0, 0], sizes = [16, 8], strides = [1, 1]} : vector<16x32xbf16> to vector<16x8xbf16>
    %132 = vector.extract_strided_slice %130 {offsets = [0, 8], sizes = [16, 8], strides = [1, 1]} : vector<16x32xbf16> to vector<16x8xbf16>
    %133 = vector.extract_strided_slice %130 {offsets = [0, 16], sizes = [16, 8], strides = [1, 1]} : vector<16x32xbf16> to vector<16x8xbf16>
    %134 = vector.extract_strided_slice %130 {offsets = [0, 24], sizes = [16, 8], strides = [1, 1]} : vector<16x32xbf16> to vector<16x8xbf16>
    %135 = vector.shape_cast %131 : vector<16x8xbf16> to vector<1x16x8xbf16>
    %136 = vector.shape_cast %132 : vector<16x8xbf16> to vector<1x16x8xbf16>
    %137 = vector.shape_cast %133 : vector<16x8xbf16> to vector<1x16x8xbf16>
    %138 = vector.shape_cast %134 : vector<16x8xbf16> to vector<1x16x8xbf16>
    %139 = tpu.concatenate %135, %136, %137, %138 in 0 : vector<1x16x8xbf16>, vector<1x16x8xbf16>, vector<1x16x8xbf16>, vector<1x16x8xbf16> -> vector<4x16x8xbf16>
    %140 = arith.truncf %119 : vector<16x32xf32> to vector<16x32xbf16>
    %141 = vector.extract_strided_slice %140 {offsets = [0, 0], sizes = [16, 8], strides = [1, 1]} : vector<16x32xbf16> to vector<16x8xbf16>
    %142 = vector.extract_strided_slice %140 {offsets = [0, 8], sizes = [16, 8], strides = [1, 1]} : vector<16x32xbf16> to vector<16x8xbf16>
    %143 = vector.extract_strided_slice %140 {offsets = [0, 16], sizes = [16, 8], strides = [1, 1]} : vector<16x32xbf16> to vector<16x8xbf16>
    %144 = vector.extract_strided_slice %140 {offsets = [0, 24], sizes = [16, 8], strides = [1, 1]} : vector<16x32xbf16> to vector<16x8xbf16>
    %145 = vector.shape_cast %141 : vector<16x8xbf16> to vector<1x16x8xbf16>
    %146 = vector.shape_cast %142 : vector<16x8xbf16> to vector<1x16x8xbf16>
    %147 = vector.shape_cast %143 : vector<16x8xbf16> to vector<1x16x8xbf16>
    %148 = vector.shape_cast %144 : vector<16x8xbf16> to vector<1x16x8xbf16>
    %149 = tpu.concatenate %145, %146, %147, %148 in 0 : vector<1x16x8xbf16>, vector<1x16x8xbf16>, vector<1x16x8xbf16>, vector<1x16x8xbf16> -> vector<4x16x8xbf16>
    %cst_41 = arith.constant dense<0.000000e+00> : vector<4x8x16xf32>
    %150 = tpu.matmul %129, %139, %cst_41 {dimension_numbers = #tpu.dot_dimension_numbers<[2], [2], [1], [1], [0, 0, 0, 1, 1, 1], [0], [0]>} : vector<4x8x8xbf16>, vector<4x16x8xbf16>, vector<4x8x16xf32> -> vector<4x8x16xf32>
    %cst_42 = arith.constant 0.353553385 : f32
    %151 = vector.broadcast %cst_42 : f32 to vector<4x8x16xf32>
    %152 = arith.mulf %150, %151 : vector<4x8x16xf32>
    %cst_43 = arith.constant dense<0xFF800000> : vector<4x8xf32>
    %153 = vector.multi_reduction <maximumf>, %152, %cst_43 [2] : vector<4x8x16xf32> to vector<4x8xf32>
    %154 = vector.shape_cast %153 : vector<4x8xf32> to vector<4x8x1xf32>
    %155 = vector.broadcast %154 : vector<4x8x1xf32> to vector<4x8x16xf32>
    %156 = arith.subf %152, %155 : vector<4x8x16xf32>
    %157 = math.exp %156 : vector<4x8x16xf32>
    %cst_44 = arith.constant dense<0.000000e+00> : vector<4x8xf32>
    %158 = vector.multi_reduction <add>, %157, %cst_44 [2] : vector<4x8x16xf32> to vector<4x8xf32>
    %159 = vector.shape_cast %158 : vector<4x8xf32> to vector<4x8x1xf32>
    %160 = tpu.reciprocal %159 {approx = true} : vector<4x8x1xf32> -> vector<4x8x1xf32>
    %161 = vector.broadcast %160 : vector<4x8x1xf32> to vector<4x8x16xf32>
    %162 = arith.mulf %157, %161 : vector<4x8x16xf32>
    %163 = arith.truncf %162 : vector<4x8x16xf32> to vector<4x8x16xbf16>
    %cst_45 = arith.constant dense<0.000000e+00> : vector<4x8x8xf32>
    %164 = tpu.matmul %163, %149, %cst_45 {dimension_numbers = #tpu.dot_dimension_numbers<[2], [1], [1], [2], [0, 0, 0, 1, 1, 2], [0], [0]>} : vector<4x8x16xbf16>, vector<4x16x8xbf16>, vector<4x8x8xf32> -> vector<4x8x8xf32>
    %165 = vector.extract_strided_slice %164 {offsets = [0, 0, 0], sizes = [1, 8, 8], strides = [1, 1, 1]} : vector<4x8x8xf32> to vector<1x8x8xf32>
    %166 = vector.shape_cast %165 : vector<1x8x8xf32> to vector<8x8xf32>
    %167 = vector.extract_strided_slice %164 {offsets = [1, 0, 0], sizes = [1, 8, 8], strides = [1, 1, 1]} : vector<4x8x8xf32> to vector<1x8x8xf32>
    %168 = vector.shape_cast %167 : vector<1x8x8xf32> to vector<8x8xf32>
    %169 = vector.extract_strided_slice %164 {offsets = [2, 0, 0], sizes = [1, 8, 8], strides = [1, 1, 1]} : vector<4x8x8xf32> to vector<1x8x8xf32>
    %170 = vector.shape_cast %169 : vector<1x8x8xf32> to vector<8x8xf32>
    %171 = vector.extract_strided_slice %164 {offsets = [3, 0, 0], sizes = [1, 8, 8], strides = [1, 1, 1]} : vector<4x8x8xf32> to vector<1x8x8xf32>
    %172 = vector.shape_cast %171 : vector<1x8x8xf32> to vector<8x8xf32>
    %173 = tpu.concatenate %166, %168, %170, %172 in 1 : vector<8x8xf32>, vector<8x8xf32>, vector<8x8xf32>, vector<8x8xf32> -> vector<8x32xf32>
    %174 = arith.truncf %173 : vector<8x32xf32> to vector<8x32xbf16>
    %c0_46 = arith.constant 0 : index
    %c0_47 = arith.constant 0 : index
    %175 = vector.load %arg13[%c0_46, %c0_47] : memref<32x32xbf16, #tpu.memory_space<vmem>>, vector<32x32xbf16>
    %cst_48 = arith.constant dense<0.000000e+00> : vector<8x32xf32>
    %176 = tpu.matmul %174, %175, %cst_48 {dimension_numbers = #tpu.dot_dimension_numbers<[1], [0], [0], [1], [0, 0, 1, 1], [], []>} : vector<8x32xbf16>, vector<32x32xbf16>, vector<8x32xf32> -> vector<8x32xf32>
    %c0_49 = arith.constant 0 : index
    %c0_50 = arith.constant 0 : index
    %177 = vector.load %arg14[%c0_49, %c0_50] : memref<1x32xf32, #tpu.memory_space<vmem>>, vector<1x32xf32>
    %178 = vector.broadcast %177 : vector<1x32xf32> to vector<8x32xf32>
    %179 = arith.addf %176, %178 : vector<8x32xf32>
    %180 = arith.addf %106, %179 : vector<8x32xf32>
    %181 = vector.extract_strided_slice %4 {offsets = [2, 0], sizes = [1, 32], strides = [1, 1]} : vector<6x32xf32> to vector<1x32xf32>
    %182 = vector.extract_strided_slice %4 {offsets = [3, 0], sizes = [1, 32], strides = [1, 1]} : vector<6x32xf32> to vector<1x32xf32>
    %cst_51 = arith.constant dense<0.000000e+00> : vector<8xf32>
    %183 = vector.multi_reduction <add>, %180, %cst_51 [1] : vector<8x32xf32> to vector<8xf32>
    %184 = vector.shape_cast %183 : vector<8xf32> to vector<8x1xf32>
    %cst_52 = arith.constant 3.200000e+01 : f32
    %185 = vector.broadcast %cst_52 : f32 to vector<8x1xf32>
    %186 = arith.divf %184, %185 : vector<8x1xf32>
    %187 = vector.broadcast %186 : vector<8x1xf32> to vector<8x32xf32>
    %188 = arith.subf %180, %187 : vector<8x32xf32>
    %189 = arith.mulf %188, %188 : vector<8x32xf32>
    %cst_53 = arith.constant dense<0.000000e+00> : vector<8xf32>
    %190 = vector.multi_reduction <add>, %189, %cst_53 [1] : vector<8x32xf32> to vector<8xf32>
    %191 = vector.shape_cast %190 : vector<8xf32> to vector<8x1xf32>
    %cst_54 = arith.constant 3.200000e+01 : f32
    %192 = vector.broadcast %cst_54 : f32 to vector<8x1xf32>
    %193 = arith.divf %191, %192 : vector<8x1xf32>
    %194 = vector.broadcast %186 : vector<8x1xf32> to vector<8x32xf32>
    %195 = arith.subf %180, %194 : vector<8x32xf32>
    %cst_55 = arith.constant 9.99999974E-6 : f32
    %196 = vector.broadcast %cst_55 : f32 to vector<8x1xf32>
    %197 = arith.addf %193, %196 : vector<8x1xf32>
    %198 = math.rsqrt %197 : vector<8x1xf32>
    %199 = vector.broadcast %198 : vector<8x1xf32> to vector<8x32xf32>
    %200 = arith.mulf %195, %199 : vector<8x32xf32>
    %201 = vector.broadcast %181 : vector<1x32xf32> to vector<8x32xf32>
    %202 = arith.mulf %200, %201 : vector<8x32xf32>
    %203 = vector.broadcast %182 : vector<1x32xf32> to vector<8x32xf32>
    %204 = arith.addf %202, %203 : vector<8x32xf32>
    %205 = arith.truncf %204 : vector<8x32xf32> to vector<8x32xbf16>
    %c0_56 = arith.constant 0 : index
    %c0_57 = arith.constant 0 : index
    %206 = vector.load %arg15[%c0_56, %c0_57] : memref<32x64xbf16, #tpu.memory_space<vmem>>, vector<32x64xbf16>
    %cst_58 = arith.constant dense<0.000000e+00> : vector<8x64xf32>
    %207 = tpu.matmul %205, %206, %cst_58 {dimension_numbers = #tpu.dot_dimension_numbers<[1], [0], [0], [1], [0, 0, 1, 1], [], []>} : vector<8x32xbf16>, vector<32x64xbf16>, vector<8x64xf32> -> vector<8x64xf32>
    %c0_59 = arith.constant 0 : index
    %c0_60 = arith.constant 0 : index
    %208 = vector.load %arg16[%c0_59, %c0_60] : memref<1x64xf32, #tpu.memory_space<vmem>>, vector<1x64xf32>
    %209 = vector.broadcast %208 : vector<1x64xf32> to vector<8x64xf32>
    %210 = arith.addf %207, %209 : vector<8x64xf32>
    %cst_61 = arith.constant 0.000000e+00 : f32
    %211 = vector.broadcast %cst_61 : f32 to vector<8x64xf32>
    %212 = arith.maximumf %210, %211 : vector<8x64xf32>
    %213 = arith.truncf %212 : vector<8x64xf32> to vector<8x64xbf16>
    %c0_62 = arith.constant 0 : index
    %c0_63 = arith.constant 0 : index
    %214 = vector.load %arg17[%c0_62, %c0_63] : memref<64x32xbf16, #tpu.memory_space<vmem>>, vector<64x32xbf16>
    %cst_64 = arith.constant dense<0.000000e+00> : vector<8x32xf32>
    %215 = tpu.matmul %213, %214, %cst_64 {dimension_numbers = #tpu.dot_dimension_numbers<[1], [0], [0], [1], [0, 0, 1, 1], [], []>} : vector<8x64xbf16>, vector<64x32xbf16>, vector<8x32xf32> -> vector<8x32xf32>
    %c0_65 = arith.constant 0 : index
    %c0_66 = arith.constant 0 : index
    %216 = vector.load %arg18[%c0_65, %c0_66] : memref<1x32xf32, #tpu.memory_space<vmem>>, vector<1x32xf32>
    %217 = vector.broadcast %216 : vector<1x32xf32> to vector<8x32xf32>
    %218 = arith.addf %215, %217 : vector<8x32xf32>
    %219 = arith.addf %204, %218 : vector<8x32xf32>
    %220 = vector.extract_strided_slice %4 {offsets = [4, 0], sizes = [1, 32], strides = [1, 1]} : vector<6x32xf32> to vector<1x32xf32>
    %221 = vector.extract_strided_slice %4 {offsets = [5, 0], sizes = [1, 32], strides = [1, 1]} : vector<6x32xf32> to vector<1x32xf32>
    %cst_67 = arith.constant dense<0.000000e+00> : vector<8xf32>
    %222 = vector.multi_reduction <add>, %219, %cst_67 [1] : vector<8x32xf32> to vector<8xf32>
    %223 = vector.shape_cast %222 : vector<8xf32> to vector<8x1xf32>
    %cst_68 = arith.constant 3.200000e+01 : f32
    %224 = vector.broadcast %cst_68 : f32 to vector<8x1xf32>
    %225 = arith.divf %223, %224 : vector<8x1xf32>
    %226 = vector.broadcast %225 : vector<8x1xf32> to vector<8x32xf32>
    %227 = arith.subf %219, %226 : vector<8x32xf32>
    %228 = arith.mulf %227, %227 : vector<8x32xf32>
    %cst_69 = arith.constant dense<0.000000e+00> : vector<8xf32>
    %229 = vector.multi_reduction <add>, %228, %cst_69 [1] : vector<8x32xf32> to vector<8xf32>
    %230 = vector.shape_cast %229 : vector<8xf32> to vector<8x1xf32>
    %cst_70 = arith.constant 3.200000e+01 : f32
    %231 = vector.broadcast %cst_70 : f32 to vector<8x1xf32>
    %232 = arith.divf %230, %231 : vector<8x1xf32>
    %233 = vector.broadcast %225 : vector<8x1xf32> to vector<8x32xf32>
    %234 = arith.subf %219, %233 : vector<8x32xf32>
    %cst_71 = arith.constant 9.99999974E-6 : f32
    %235 = vector.broadcast %cst_71 : f32 to vector<8x1xf32>
    %236 = arith.addf %232, %235 : vector<8x1xf32>
    %237 = math.rsqrt %236 : vector<8x1xf32>
    %238 = vector.broadcast %237 : vector<8x1xf32> to vector<8x32xf32>
    %239 = arith.mulf %234, %238 : vector<8x32xf32>
    %240 = vector.broadcast %220 : vector<1x32xf32> to vector<8x32xf32>
    %241 = arith.mulf %239, %240 : vector<8x32xf32>
    %242 = vector.broadcast %221 : vector<1x32xf32> to vector<8x32xf32>
    %243 = arith.addf %241, %242 : vector<8x32xf32>
    %244 = vector.shape_cast %243 : vector<8x32xf32> to vector<1x8x32xf32>
    %c0_72 = arith.constant 0 : index
    %c0_73 = arith.constant 0 : index
    %c0_74 = arith.constant 0 : index
    %245 = vector.load %arg20[%c0_72, %c0_73, %c0_74] : memref<1x8x32xf32, #tpu.memory_space<vmem>>, vector<1x8x32xf32>
    tpu.vector_store %arg20[%c0_72, %c0_73, %c0_74], %244 {strides = array<i32>} : memref<1x8x32xf32, #tpu.memory_space<vmem>>, vector<1x8x32xf32>,
    return
  }
  func.func @transform_0(%arg0: i32) -> (i32, i32, i32) {
    %c0_i32 = arith.constant 0 : i32
    %c0_i32_0 = arith.constant 0 : i32
    %c0_i32_1 = arith.constant 0 : i32
    return %arg0, %c0_i32, %c0_i32_0 : i32, i32, i32
  }
  func.func @transform_1(%arg0: i32) -> (i32, i32, i32) {
    %c0_i32 = arith.constant 0 : i32
    %c0_i32_0 = arith.constant 0 : i32
    %c0_i32_1 = arith.constant 0 : i32
    return %arg0, %c0_i32, %c0_i32_0 : i32, i32, i32
  }
  func.func @transform_2(%arg0: i32) -> (i32, i32) {
    %c0_i32 = arith.constant 0 : i32
    %c0_i32_0 = arith.constant 0 : i32
    %c0_i32_1 = arith.constant 0 : i32
    return %c0_i32, %c0_i32_0 : i32, i32
  }
  func.func @transform_3(%arg0: i32) -> (i32, i32, i32) {
    %c0_i32 = arith.constant 0 : i32
    %c0_i32_0 = arith.constant 0 : i32
    %c0_i32_1 = arith.constant 0 : i32
    return %arg0, %c0_i32, %c0_i32_0 : i32, i32, i32
  }
  func.func @transform_4(%arg0: i32) -> (i32, i32) {
    %c0_i32 = arith.constant 0 : i32
    %c0_i32_0 = arith.constant 0 : i32
    %c0_i32_1 = arith.constant 0 : i32
    return %c0_i32, %c0_i32_0 : i32, i32
  }
  func.func @transform_5(%arg0: i32) -> (i32, i32) {
    %c0_i32 = arith.constant 0 : i32
    %c0_i32_0 = arith.constant 0 : i32
    %c0_i32_1 = arith.constant 0 : i32
    return %c0_i32, %c0_i32_0 : i32, i32
  }
  func.func @transform_6(%arg0: i32) -> (i32, i32) {
    %c0_i32 = arith.constant 0 : i32
    %c0_i32_0 = arith.constant 0 : i32
    %c0_i32_1 = arith.constant 0 : i32
    return %c0_i32, %c0_i32_0 : i32, i32
  }
  func.func @transform_7(%arg0: i32) -> (i32, i32) {
    %c0_i32 = arith.constant 0 : i32
    %c0_i32_0 = arith.constant 0 : i32
    %c0_i32_1 = arith.constant 0 : i32
    return %c0_i32, %c0_i32_0 : i32, i32
  }
  func.func @transform_8(%arg0: i32) -> (i32, i32) {
    %c0_i32 = arith.constant 0 : i32
    %c0_i32_0 = arith.constant 0 : i32
    %c0_i32_1 = arith.constant 0 : i32
    return %c0_i32, %c0_i32_0 : i32, i32
  }
  func.func @transform_9(%arg0: i32) -> (i32, i32) {
    %c0_i32 = arith.constant 0 : i32
    %c0_i32_0 = arith.constant 0 : i32
    %c0_i32_1 = arith.constant 0 : i32
    return %c0_i32, %c0_i32_0 : i32, i32
  }
  func.func @transform_10(%arg0: i32) -> (i32, i32) {
    %c0_i32 = arith.constant 0 : i32
    %c0_i32_0 = arith.constant 0 : i32
    %c0_i32_1 = arith.constant 0 : i32
    return %c0_i32, %c0_i32_0 : i32, i32
  }
  func.func @transform_11(%arg0: i32) -> (i32, i32) {
    %c0_i32 = arith.constant 0 : i32
    %c0_i32_0 = arith.constant 0 : i32
    %c0_i32_1 = arith.constant 0 : i32
    return %c0_i32, %c0_i32_0 : i32, i32
  }
  func.func @transform_12(%arg0: i32) -> (i32, i32) {
    %c0_i32 = arith.constant 0 : i32
    %c0_i32_0 = arith.constant 0 : i32
    %c0_i32_1 = arith.constant 0 : i32
    return %c0_i32, %c0_i32_0 : i32, i32
  }
  func.func @transform_13(%arg0: i32) -> (i32, i32) {
    %c0_i32 = arith.constant 0 : i32
    %c0_i32_0 = arith.constant 0 : i32
    %c0_i32_1 = arith.constant 0 : i32
    return %c0_i32, %c0_i32_0 : i32, i32
  }
  func.func @transform_14(%arg0: i32) -> (i32, i32) {
    %c0_i32 = arith.constant 0 : i32
    %c0_i32_0 = arith.constant 0 : i32
    %c0_i32_1 = arith.constant 0 : i32
    return %c0_i32, %c0_i32_0 : i32, i32
  }
  func.func @transform_15(%arg0: i32) -> (i32, i32) {
    %c0_i32 = arith.constant 0 : i32
    %c0_i32_0 = arith.constant 0 : i32
    %c0_i32_1 = arith.constant 0 : i32
    return %c0_i32, %c0_i32_0 : i32, i32
  }
  func.func @transform_16(%arg0: i32) -> (i32, i32) {
    %c0_i32 = arith.constant 0 : i32
    %c0_i32_0 = arith.constant 0 : i32
    %c0_i32_1 = arith.constant 0 : i32
    return %c0_i32, %c0_i32_0 : i32, i32
  }
  func.func @transform_17(%arg0: i32) -> (i32, i32) {
    %c0_i32 = arith.constant 0 : i32
    %c0_i32_0 = arith.constant 0 : i32
    %c0_i32_1 = arith.constant 0 : i32
    return %c0_i32, %c0_i32_0 : i32, i32
  }
  func.func @transform_18(%arg0: i32) -> (i32, i32) {
    %c0_i32 = arith.constant 0 : i32
    %c0_i32_0 = arith.constant 0 : i32
    %c0_i32_1 = arith.constant 0 : i32
    return %c0_i32, %c0_i32_0 : i32, i32
  }
  func.func @transform_19(%arg0: i32) -> (i32, i32, i32) {
    %c0_i32 = arith.constant 0 : i32
    %c0_i32_0 = arith.constant 0 : i32
    %c0_i32_1 = arith.constant 0 : i32
    return %arg0, %c0_i32, %c0_i32_0 : i32, i32, i32
  }
}

</mosaic_0001>

<bundles_post_ra>
// kernel: caption_model_forward.7
= control target key start
LH: loop header
LB: loop body
LE: loop exit
PB: predicated region body
PF: predicated region fallthrough
CT: control target
= control target key end

     0   :  { %vm38_vm0 = vcmask 261120   ;;  %vm56_vm1 = vcmask 523264   ;;  %s116_s1 = inlined_call_operand.vmem [shape: bf16[32,64], index: 1, kind: input, shape index: {}]   ;;  %s117_s0 = inlined_call_operand.vmem [shape: f32[16,32], index: 0, kind: input, shape index: {}]   ;;  %s118_s2 = inlined_call_operand.vmem [shape: f32[1,64], index: 2, kind: input, shape index: {}]   ;;  %s119_s3 = inlined_call_operand.vmem [shape: f32[16,64], index: 3, kind: output, shape index: {}]  }
   0x1   :  { %v73_v0 = vld [vmem:[%s116_s1 + $0x8] sm:$0xff]  ;;  %v72_v1 = vld [vmem:[%s116_s1] sm:$0xff] }
   0x2   :  { %48 = vmatpush.bf16.msra.mxu0 %v73_v0  ;;  %v15_v2 = vld [vmem:[%s117_s0] sm:$0xff]  ;;  %v16_v3 = vld [vmem:[%s117_s0 + $0x8] sm:$0xff] }
   0x3   :  { %v17_v4 = vpack.c.bf16 %v16_v3, %v15_v2  ;;  %v74_v5 = vld [vmem:[%s118_s2] ss:$0 sm:$0xff] }
   0x6   :  { %49 = vmatpush.bf16.msra.mxu0 %v72_v1 }
   0x9   :  { %71 = vmatmul.msk.bf16.vlgmr.msra.gmra.mxu0 %vm38_vm0, %v17_v4 }
  0x86   :  { %v51_v6 = vpop.f32.mrf.mxu0 }
  0x87   :  { %v52_v7 = vadd.f32 %v74_v5, %v51_v6 }
  0x89   :  { %57 = vst.msk [vmem:[%s119_s3] sm:$0xff] %vm56_vm1, %v52_v7 }
  0x8e   :  { %v53_v8 = vpop.f32.mrf.mxu0 }
  0x8f   :  { %v54_v9 = vadd.f32 %v74_v5, %v53_v8 }
  0x91   :  { %58 = vst.msk [vmem:[%s119_s3 + $0x8] sm:$0xff] %vm56_vm1, %v54_v9 }

// kernel: caption_model_forward.4
= control target key start
LH: loop header
LB: loop body
LE: loop exit
PB: predicated region body
PF: predicated region fallthrough
CT: control target
= control target key end

     0   :  { %s587_s21 = smov 0   ;;  %s653_s0 = inlined_call_operand.vmem [shape: bf16[2,16,128], index: 0, kind: input, shape index: {}]   ;;  %s654_s1 = inlined_call_operand.vmem [shape: bf16[128,32], index: 1, kind: input, shape index: {}]   ;;  %s655_s2 = inlined_call_operand.vmem [shape: f32[1,32], index: 2, kind: input, shape index: {}]   ;;  %s656_s3 = inlined_call_operand.vmem [shape: f32[1,32], index: 3, kind: input, shape index: {}]   ;;  %s657_s4 = inlined_call_operand.vmem [shape: f32[1,32], index: 4, kind: input, shape index: {}]   ;;  %s658_s5 = inlined_call_operand.vmem [shape: f32[16,32], index: 5, kind: input, shape index: {}]   ;;  %s659_s6 = inlined_call_operand.vmem [shape: f32[2,16,32], index: 6, kind: output, shape index: {}]  }
   0x1 LB: > { %s467_s22 = sadd.s32 4294967295, %s549_s21   ;;  %p471_p0 = scmp.ge.s32.totalorder %s549_s21, 1  ;;  %s549_s21 = sphi %s587_s21, %s16_s21  }
   0x2   : > { %p212_p1 = scmp.lt.s32.totalorder %s549_s21, 3 }
   0x4   : > { %p213_p2 = pnand %p471_p0, %p212_p1 }
   0x5   : > { %p242_p3 = scmp.lt.s32.totalorder (!%p213_p2), %s467_s22, 1 }
   0x6   : > { %216 = sbr.rel (%p213_p2) target bundleno = 450 (0x1c2), region = 44 }
   0xb   : > { %v524_v0 = vld [vmem:[%s654_s1 + $0x38] sm:$0xff]  ;;  %v523_v1 = vld [vmem:[%s654_s1 + $0x30] sm:$0xff]  ;;  %v522_v2 = vld [vmem:[%s654_s1 + $0x28] sm:$0xff]  ;;  %s661_s22 = smov (!%p242_p3, %s467_s22), 1  ;;  %vm342_vm0 = vcmask 261120   ;;  %v551_v16 = vmov 32.0  }
   0xc   : > { %328 = vmatpush.bf16.msra.mxu0 %v524_v0  ;;  %v521_v3 = vld [vmem:[%s654_s1 + $0x20] sm:$0xff]  ;;  %v520_v4 = vld [vmem:[%s654_s1 + $0x18] sm:$0xff]  ;;  %v519_v5 = vld [vmem:[%s654_s1 + $0x10] sm:$0xff]  ;;  %s514_s13 = sshll.u32 %s661_s22, 3  ;;  %537 = vrcp.f32 %v551_v16  ;;  %s515_s27 = sshll.u32 %s661_s22, 4 }
   0xd   : > { %v518_v6 = vld [vmem:[%s654_s1 + $0x8] sm:$0xff]  ;;  %v517_v7 = vld [vmem:[%s654_s1] sm:$0xff]  ;;  %s246_s18 = scalar_lea.vmem %s653_s0, %s514_s13  ;;  %s251_s8 = scalar_lea.vmem %s659_s6, %s515_s27 }
   0xe   : > { %v516_v8 = vld [vmem:[%s246_s18] sm:$0xff]  ;;  %v407_v62 = vld [vmem:[%s658_s5 + $0x8] sm:$0xff] }
   0xf   : > { %v534_v9 = vld [vmem:[%s655_s2] ss:$0 sm:$0xff] }
  0x10   : > { %329 = vmatpush.bf16.msra.mxu0 %v523_v1  ;;  %v535_v47 = vld [vmem:[%s656_s3] ss:$0 sm:$0xff] }
  0x11   : > { %v536_v50 = vld [vmem:[%s657_s4] ss:$0 sm:$0xff] }
  0x12   : > { %v538_v17 = vpop.eup %537  ;;  %v406_v54 = vld [vmem:[%s658_s5] sm:$0xff] }
  0x13   : > { %v350_v18 = vmul.f32 32.0, %v538_v17  ;;  %vm354_vm1 = vweird.f32 %v538_v17 }
  0x14   : > { %330 = vmatpush.bf16.msra.mxu0 %v522_v2 }
  0x15   : > { %v351_v19 = vsub.f32 1.0, %v350_v18 }
  0x17   : > { %v352_v20 = vmul.f32 %v538_v17, %v351_v19 }
  0x18   : > { %331 = vmatpush.bf16.msra.mxu0 %v521_v3 }
  0x19   : > { %v353_v21 = vadd.f32 %v538_v17, %v352_v20 }
  0x1b   : > { %v355_v22 = vsel %vm354_vm1, %v538_v17, %v353_v21 }
  0x1c   : > { %332 = vmatpush.bf16.msra.mxu0 %v520_v4 }
  0x20   : > { %333 = vmatpush.bf16.msra.mxu0 %v519_v5 }
  0x24   : > { %334 = vmatpush.bf16.msra.mxu0 %v518_v6 }
  0x28   : > { %335 = vmatpush.bf16.msra.mxu0 %v517_v7 }
  0x2b   : > { %336 = vmatmul.bf16.vlgmr.msra.gmra.mxu0 %v516_v8 }
  0xa8   : > { %v337_v10 = vpop.f32.mrf.mxu0 }
  0xa9   : > { %v338_v11 = vadd.f32 %v534_v9, %v337_v10 }
  0xab   : > { %v343_v12 = vsel %vm342_vm0, %v338_v11, 0.0 }
  0xac   : > { %344 = vadd.xlane.f32.xlu0 %v343_v12 }
  0xb0   : > { %v339_v13 = vpop.f32.mrf.mxu0 }
  0xb1   : > { %v340_v14 = vadd.f32 %v534_v9, %v339_v13 }
  0xb3   : > { %v346_v15 = vsel %vm342_vm0, %v340_v14, 0.0 }
  0xb4   : > { %347 = vadd.xlane.f32.xlu0 %v346_v15 }
 0x11f   : > { %v345_v23 = vpop.xlane.xlu0 %344 }
 0x120   : > { %v356_v24 = vmul.f32 %v355_v22, %v345_v23 }
 0x122   : > { %v358_v25 = vsub.f32 %v338_v11, %v356_v24 }
 0x124   : > { %v360_v26 = vmul.f32 %v358_v25, %v358_v25 }
 0x126   : > { %v362_v27 = vsel %vm342_vm0, %v360_v26, 0.0 }
 0x127   : > { %363 = vadd.xlane.f32.xlu1 %v362_v27  ;;  %v348_v28 = vpop.xlane.xlu0 %347 }
 0x128   : > { %v357_v29 = vmul.f32 %v355_v22, %v348_v28 }
 0x12a   : > { %v359_v30 = vsub.f32 %v340_v14, %v357_v29 }
 0x12c   : > { %v361_v31 = vmul.f32 %v359_v30, %v359_v30 }
 0x12e   : > { %v365_v32 = vsel %vm342_vm0, %v361_v31, 0.0 }
 0x12f   : > { %366 = vadd.xlane.f32.xlu1 %v365_v32 }
 0x19a   : > { %v364_v33 = vpop.xlane.xlu1 %363 }
 0x19b   : > { %v368_v34 = vmul.f32 %v364_v33, %v355_v22 }
 0x19d   : > { %v370_v35 = vadd.f32 1e-06, %v368_v34 }
 0x19f   : > { %539 = vrsqrt.f32 %v370_v35  ;;  %vm378_vm3 = vweird.f32 %v370_v35 }
 0x1a2   : > { %v367_v36 = vpop.xlane.xlu1 %366 }
 0x1a3   : > { %v369_v37 = vmul.f32 %v367_v36, %v355_v22 }
 0x1a5   : > { %v540_v38 = vpop.eup %539  ;;  %v371_v39 = vadd.f32 1e-06, %v369_v37 }
 0x1a6   : > { %v373_v40 = vmul.f32 %v540_v38, %v370_v35  ;;  %vm379_vm2 = vweird.f32 %v540_v38 }
 0x1a7   : > { %541 = vrsqrt.f32 %v371_v39  ;;  %vm380_vm4 = vmor %vm378_vm3, %vm379_vm2  ;;  %vm388_vm6 = vweird.f32 %v371_v39 }
 0x1a8   : > { %v374_v41 = vmul.f32 %v540_v38, %v373_v40 }
 0x1aa   : > { %v375_v42 = vmul.f32 0.5, %v374_v41 }
 0x1ac   : > { %v376_v43 = vsub.f32 1.5, %v375_v42 }
 0x1ad   : > { %v542_v44 = vpop.eup %541 }
 0x1ae   : > { %v377_v45 = vmul.f32 %v540_v38, %v376_v43  ;;  %v383_v46 = vmul.f32 %v542_v44, %v371_v39  ;;  %vm389_vm5 = vweird.f32 %v542_v44 }
 0x1af   : > { %vm390_vm7 = vmor %vm388_vm6, %vm389_vm5 }
 0x1b0   : > { %v381_v48 = vsel %vm380_vm4, %v540_v38, %v377_v45  ;;  %v384_v49 = vmul.f32 %v542_v44, %v383_v46 }
 0x1b1   : > { %v392_v51 = vmul.f32 %v381_v48, %v358_v25 }
 0x1b2   : > { %v385_v52 = vmul.f32 0.5, %v384_v49 }
 0x1b3   : > { %v398_v53 = vmul.f32 %v535_v47, %v392_v51 }
 0x1b4   : > { %v386_v55 = vsub.f32 1.5, %v385_v52 }
 0x1b5   : > { %v404_v56 = vadd.f32 %v536_v50, %v398_v53 }
 0x1b6   : > { %v387_v57 = vmul.f32 %v542_v44, %v386_v55 }
 0x1b7   : > { %v408_v58 = vadd.f32 %v406_v54, %v404_v56 }
 0x1b8   : > { %v391_v59 = vsel %vm390_vm7, %v542_v44, %v387_v57 }
 0x1b9   : > { %410 = vst.msk [vmem:[%s251_s8] sm:$0xff] %vm342_vm0, %v408_v58  ;;  %v393_v60 = vmul.f32 %v391_v59, %v359_v30 }
 0x1bb   : > { %v399_v61 = vmul.f32 %v535_v47, %v393_v60 }
 0x1bd   : > { %v405_v63 = vadd.f32 %v536_v50, %v399_v61 }
 0x1bf   : > { %v409_v0 = vadd.f32 %v407_v62, %v405_v63 }
 0x1c1   : > { %411 = vst.msk [vmem:[%s251_s8 + $0x8] sm:$0xff] %vm342_vm0, %v409_v0 }
 0x1c2 PF: > { %s16_s21 = sadd.s32 1, %s549_s21  }
 0x1c3   : > { %p13_p4 = scmp.ge.s32.totalorder %s16_s21, 4  }
 0x1c5   :  { %15 = sbr.rel (!%p13_p4) target bundleno = 1 (0x1), region = 74 }

// kernel: caption_model_forward.5
= control target key start
LH: loop header
LB: loop body
LE: loop exit
PB: predicated region body
PF: predicated region fallthrough
CT: control target
= control target key end

     0   :  { %s2156_s0 = inlined_call_operand.vmem [shape: f32[2,8,32], index: 0, kind: input, shape index: {}]   ;;  %s2157_s1 = inlined_call_operand.vmem [shape: bf16[2,16,32], index: 1, kind: input, shape index: {}]   ;;  %s2158_s2 = inlined_call_operand.vmem [shape: f32[8,8], index: 2, kind: input, shape index: {}]   ;;  %s2159_s3 = inlined_call_operand.vmem [shape: f32[2,1,8], index: 3, kind: input, shape index: {}]   ;;  %s2160_s4 = inlined_call_operand.vmem [shape: bf16[32,96], index: 4, kind: input, shape index: {}]   ;;  %s2161_s5 = inlined_call_operand.vmem [shape: f32[1,96], index: 5, kind: input, shape index: {}]   ;;  %s2162_s6 = inlined_call_operand.vmem [shape: bf16[32,32], index: 6, kind: input, shape index: {}]   ;;  %s2163_s7 = inlined_call_operand.vmem [shape: f32[1,32], index: 7, kind: input, shape index: {}]   ;;  %s2164_s8 = inlined_call_operand.vmem [shape: bf16[32,32], index: 8, kind: input, shape index: {}]   ;;  %s2165_s9 = inlined_call_operand.vmem [shape: f32[1,32], index: 9, kind: input, shape index: {}]   ;;  %s2166_s10 = inlined_call_operand.vmem [shape: bf16[32,64], index: 10, kind: input, shape index: {}]   ;;  %s2167_s11 = inlined_call_operand.vmem [shape: f32[1,64], index: 11, kind: input, shape index: {}]   ;;  %s2168_s12 = inlined_call_operand.vmem [shape: bf16[32,32], index: 12, kind: input, shape index: {}]   ;;  %s2169_s13 = inlined_call_operand.vmem [shape: f32[1,32], index: 13, kind: input, shape index: {}]   ;;  %s2170_s14 = inlined_call_operand.vmem [shape: bf16[32,64], index: 14, kind: input, shape index: {}]   ;;  %s2171_s15 = inlined_call_operand.vmem [shape: f32[1,64], index: 15, kind: input, shape index: {}]   ;;  %s2172_s16 = inlined_call_operand.vmem [shape: bf16[64,32], index: 16, kind: input, shape index: {}]   ;;  %s2173_s17 = inlined_call_operand.vmem [shape: f32[1,32], index: 17, kind: input, shape index: {}]   ;;  %s2174_s18 = inlined_call_operand.vmem [shape: f32[6,32], index: 18, kind: input, shape index: {}]   ;;  %s2175_s19 = inlined_call_operand.vmem [shape: f32[2,8,32], index: 19, kind: output, shape index: {}]  }
   0x1   :  { %2180 = sst [smem:[#allocation2_spill]] %s2156_s0  ;;  %s1905_s0 = smov 0  }
   0x2   :  { %2181 = sst [smem:[#allocation3_spill]] %s2157_s1 }
   0x3   :  { %2182 = sst [smem:[#allocation4_spill]] %s2158_s2 }
   0x4   :  { %2183 = sst [smem:[#allocation5_spill]] %s2159_s3 }
   0x5 LB: > { %s1603_s30 = sadd.s32 4294967295, %s1794_s0   ;;  %p1607_p0 = scmp.ge.s32.totalorder %s1794_s0, 1  ;;  %s1794_s0 = sphi %s1905_s0, %s29_s0  }
   0x6   : > { %p554_p1 = scmp.lt.s32.totalorder %s1794_s0, 3 }
   0x8   : > { %p555_p2 = pnand %p1607_p0, %p554_p1 }
   0x9   : > { %p616_p3 = scmp.lt.s32.totalorder (!%p555_p2), %s1603_s30, 1  ;;  %s2184_s25 = sld [smem:[#allocation5_spill]] (!%p555_p2) }
   0xa   : > { %558 = sbr.rel (%p555_p2) target bundleno = 3278 (0xcce), region = 96  ;;  %s2185_s28 = sld [smem:[#allocation2_spill]] (!%p555_p2) }
   0xb   : > { %s1796_s1 = smov (!%p555_p2), 104   ;;  %s1797_s22 = smov (!%p555_p2), 120  }
   0xc   : > { %s1798_s23 = smov (!%p555_p2), 112   ;;  %s1799_s24 = smov (!%p555_p2), 96  }
   0xd   : > { %s2186_s20 = sld [smem:[#allocation4_spill]] (!%p555_p2)  ;;  %s2178_s21 = smov (!%p555_p2), 8  }
   0xe   : > { %s2177_s26 = smov (!%p555_p2), 24  }
   0xf   : > { %v1708_v0 = vld [vmem:[%s2160_s4 + $0x8] sm:$0xff]  ;;  %v1707_v1 = vld [vmem:[%s2160_s4] sm:$0xff]  ;;  %s2192_s30 = smov (!%p616_p3, %s1603_s30), 1  ;;  %vm658_vm0 = vcmask 261120   ;;  %vm693_vm1 = vcmask 64512   ;;  %vm843_vm2 = vcmask 1043456  }
  0x10   : > { %668 = vmatpush.bf16.msra.mxu0 %v1708_v0  ;;  %s1922_s2 = sshll.u32 %s2192_s30, 3  ;;  %s627_s3 = scalar_lea.vmem %s2184_s25, %s2192_s30  ;;  %v1741_v4 = vld [vmem:[%s2161_s5] ss:$0 sm:$0xff]  ;;  %vm936_vm3 = vcmask 130048   ;;  %vm938_vm4 = vcmask 195584   ;;  %vm1484_vm12 = vcmask 523264  }
  0x11   : > { %s619_s29 = scalar_lea.vmem %s2185_s28, %s1922_s2  ;;  %v1740_v28 = vld [vmem:[%s627_s3] ss:$0 sm:$0xff]  ;;  %s1800_s30 = smov 64  }
  0x12   : > { %v1932_v2 = vld [vmem:[%s619_s29] sm:$0xff]  ;;  %s2179_s3 = smov 16  }
  0x13   : > { %v637_v3 = vpack.c.bf16 %v1932_v2, %v1932_v2  ;;  %v675_v29 = vld [vmem:[%s2186_s20] sm:$0xff] }
  0x14   : > { %669 = vmatpush.bf16.msra.mxu0 %v1707_v1  ;;  %v680_v30 = vadd.f32 %v1740_v28, %v675_v29 }
  0x17   : > { %1620 = vmatmul.msk.bf16.vlgmr.msra.gmra.mxu0 %vm658_vm0, %v637_v3 }
  0x94   : > { %v671_v5 = vpop.f32.mrf.mxu0 }
  0x95   : > { %v672_v6 = vadd.f32 %v1741_v4, %v671_v5 }
  0x97   : > { %v681_v7 = vpack.c.bf16 %v672_v6, %v672_v6 }
  0x99   : > { %687 = vrot.lane.b32.xlu1 %v681_v7, %s1796_s1  ;;  %683 = vrot.lane.b32.xlu0 %v681_v7, %s1797_s22  ;;  %v689_v9 = vunpack.c.l.b16 %v681_v7 }
  0x9b   : > { %v1943_v10 = vpack.c.b16 %v689_v9, %v689_v9 }
  0x9c   : > { %v673_v8 = vpop.f32.mrf.mxu0 }
  0xa1   : > { %685 = vrot.lane.b32.xlu0 %v681_v7, %s1798_s23 }
  0xa9   : > { %691 = vrot.lane.b32.xlu0 %v1943_v10, %s1799_s24 }
 0x10b   : > { %v684_v11 = vpop.permute.xlu0 %683  ;;  %v688_v17 = vpop.permute.xlu1 %687 }
 0x10c   : > { %v713_v12 = vunpack.c.l.b16 %v684_v11  ;;  %v759_v18 = vunpack.c.l.b16 %v688_v17 }
 0x10e   : > { %v1947_v13 = vpack.c.b16 %v713_v12, %v713_v12  ;;  %v1956_v21 = vpack.c.b16 %v759_v18, %v759_v18 }
 0x110   : > { %715 = vrot.lane.b32.xlu1 %v1947_v13, %s1799_s24 }
 0x113   : > { %v686_v14 = vpop.permute.xlu0 %685 }
 0x114   : > { %v736_v15 = vunpack.c.l.b16 %v686_v14 }
 0x116   : > { %v1951_v16 = vpack.c.b16 %v736_v15, %v736_v15 }
 0x118   : > { %738 = vrot.lane.b32.xlu2 %v1951_v16, %s1799_s24 }
 0x11b   : > { %v692_v19 = vpop.permute.xlu0 %691 }
 0x11c   : > { %v698_v20 = vsel %vm693_vm1, %v692_v19, 0 }
 0x11d   : > { %707 = vmatpush.bf16.xpose.msra.mxu1 %v698_v20 }
 0x120   : > { %761 = vrot.lane.b32.xlu2 %v1956_v21, %s1799_s24 }
 0x124   : > { %1621 = vmatmul.msk.bf16.vlgmr.msra.gmra.mxu1 %vm693_vm1, %v681_v7 }
 0x172   : > { %v739_v22 = vpop.permute.xlu2 %738 }
 0x173   : > { %v744_v23 = vsel %vm693_vm1, %v739_v22, 0 }
 0x174   : > { %753 = vmatpush.bf16.xpose.msra.mxu3 %v744_v23 }
 0x17a   : > { %v762_v24 = vpop.permute.xlu2 %761 }
 0x17b   : > { %1623 = vmatmul.msk.bf16.vlgmr.msra.gmra.mxu3 %vm693_vm1, %v686_v14  ;;  %v767_v25 = vsel %vm693_vm1, %v762_v24, 0 }
 0x17c   : > { %776 = vmatpush.bf16.xpose.msrb.mxu0 %v767_v25 }
 0x182   : > { %v716_v26 = vpop.permute.xlu1 %715 }
 0x183   : > { %1624 = vmatmul.msk.bf16.vlgmr.msrb.gmra.mxu0 %vm693_vm1, %v688_v17  ;;  %v721_v27 = vsel %vm693_vm1, %v716_v26, 0 }
 0x184   : > { %730 = vmatpush.bf16.xpose.msra.mxu2 %v721_v27 }
 0x18b   : > { %1622 = vmatmul.msk.bf16.vlgmr.msra.gmra.mxu2 %vm693_vm1, %v684_v11 }
 0x1a1   : > { %v709_v31 = vpop.f32.mrf.mxu1 }
 0x1a2   : > { %v782_v32 = vmul.f32 0.35355338, %v709_v31 }
 0x1a4   : > { %v786_v33 = vadd.f32 %v782_v32, %v680_v30 }
 0x1a6   : > { %v790_v45 = vsel %vm693_vm1, %v786_v33, -inf }
 0x1a9   : > { %v711_v34 = vpop.f32.mrf.mxu1 }
 0x1fe   : > { %v755_v35 = vpop.f32.mrf.mxu3 }
 0x1ff   : > { %v784_v36 = vmul.f32 0.35355338, %v755_v35 }
 0x200   : > { %v778_v37 = vpop.f32.mrf.mxu0 }
 0x201   : > { %v785_v38 = vmul.f32 0.35355338, %v778_v37  ;;  %v788_v39 = vadd.f32 %v784_v36, %v680_v30 }
 0x203   : > { %v796_v40 = vsel %vm693_vm1, %v788_v39, -inf  ;;  %v789_v41 = vadd.f32 %v785_v38, %v680_v30 }
 0x204   : > { %797 = vmax.xlane.f32.xlu2 %v796_v40  ;;  %v1710_v40 = vld [vmem:[%s2162_s6 + $0x8] sm:$0xff] }
 0x205   : > { %v799_v42 = vsel %vm693_vm1, %v789_v41, -inf }
 0x206   : > { %v757_v43 = vpop.f32.mrf.mxu3  ;;  %800 = vmax.xlane.f32.xlu0 %v799_v42 }
 0x208   : > { %v780_v44 = vpop.f32.mrf.mxu0 }
 0x20c   : > { %791 = vmax.xlane.f32.xlu2 %v790_v45 }
 0x20e   : > { %v732_v46 = vpop.f32.mrf.mxu2 }
 0x20f   : > { %v783_v47 = vmul.f32 0.35355338, %v732_v46 }
 0x211   : > { %v787_v48 = vadd.f32 %v783_v47, %v680_v30 }
 0x213   : > { %v793_v49 = vsel %vm693_vm1, %v787_v48, -inf }
 0x214   : > { %794 = vmax.xlane.f32.xlu1 %v793_v49  ;;  %v1742_v49 = vld [vmem:[%s2163_s7] ss:$0 sm:$0xff] }
 0x216   : > { %v734_v50 = vpop.f32.mrf.mxu2 }
 0x277   : > { %v798_v51 = vpop.xlane.xlu2 %797 }
 0x278   : > { %v804_v52 = vsub.f32 %v788_v39, %v798_v51 }
 0x279   : > { %v801_v53 = vpop.xlane.xlu0 %800 }
 0x27a   : > { %v810_v54 = vmul.f32 1.442695, %v804_v52  ;;  %v805_v55 = vsub.f32 %v789_v41, %v801_v53  ;;  %v1709_v41 = vld [vmem:[%s2162_s6] sm:$0xff] }
 0x27c   : > { %1748 = vpow2.f32 %v810_v54  ;;  %v812_v56 = vmul.f32 1.442695, %v805_v55  ;;  %v1804_v55 = vmov 32.0  }
 0x27e   : > { %1750 = vpow2.f32 %v812_v56  ;;  %v1714_v56 = vld [vmem:[%s2166_s10 + $0x8] sm:$0xff] }
 0x27f   : > { %v792_v3 = vpop.xlane.xlu2 %791 }
 0x280   : > { %v802_v4 = vsub.f32 %v786_v33, %v792_v3 }
 0x282   : > { %v1749_v57 = vpop.eup %1748  ;;  %v806_v5 = vmul.f32 1.442695, %v802_v4 }
 0x283   : > { %v820_v58 = vsel %vm693_vm1, %v1749_v57, 0.0 }
 0x284   : > { %v1751_v59 = vpop.eup %1750  ;;  %821 = vadd.xlane.f32.xlu2 %v820_v58 }
 0x285   : > { %v823_v60 = vsel %vm693_vm1, %v1751_v59, 0.0 }
 0x286   : > { %824 = vadd.xlane.f32.xlu0 %v823_v60 }
 0x287   : > { %v795_v61 = vpop.xlane.xlu1 %794 }
 0x288   : > { %v803_v62 = vsub.f32 %v787_v48, %v795_v61 }
 0x28a   : > { %v808_v63 = vmul.f32 1.442695, %v803_v62 }
 0x28c   : > { %1752 = vpow2.f32 %v808_v63 }
 0x28d   : > { %1754 = vpow2.f32 %v806_v5 }
 0x292   : > { %v1753_v0 = vpop.eup %1752 }
 0x293   : > { %v817_v1 = vsel %vm693_vm1, %v1753_v0, 0.0  ;;  %v1755_v6 = vpop.eup %1754 }
 0x294   : > { %818 = vadd.xlane.f32.xlu1 %v817_v1  ;;  %v814_v7 = vsel %vm693_vm1, %v1755_v6, 0.0 }
 0x29a   : > { %902 = vrot.lane.b32.xlu0 %v1956_v21, %s1800_s30 }
 0x29c   : > { %881 = vrot.lane.b32.xlu2 %v1951_v16, %s1800_s30 }
 0x2a2   : > { %838 = vrot.lane.b32.xlu0 %v1943_v10, %s1800_s30 }
 0x2ad   : > { %860 = vrot.lane.b32.xlu1 %v1947_v13, %s1800_s30 }
 0x2d7   : > { %815 = vadd.xlane.f32.xlu1 %v814_v7  ;;  %v1711_v7 = vld [vmem:[%s2164_s8] sm:$0xff] }
 0x2f7   : > { %v822_v8 = vpop.xlane.xlu2 %821 }
 0x2f8   : > { %1756 = vrcp.f32 %v822_v8  ;;  %v1743_v8 = vld [vmem:[%s2167_s11] ss:$0 sm:$0xff] }
 0x2f9   : > { %v825_v12 = vpop.xlane.xlu0 %824 }
 0x2fa   : > { %1758 = vrcp.f32 %v825_v12 }
 0x2fe   : > { %v1757_v9 = vpop.eup %1756 }
 0x2ff   : > { %v832_v11 = vmul.f32 %v1757_v9, %v1749_v57  ;;  %v882_v14 = vpop.permute.xlu2 %881  ;;  %v1713_v57 = vld [vmem:[%s2166_s10] sm:$0xff] }
 0x300   : > { %v887_v15 = vsel %vm843_vm2, %v882_v14, 0  ;;  %v1759_v13 = vpop.eup %1758 }
 0x301   : > { %896 = vmatpush.bf16.msrb.mxu3 %v887_v15  ;;  %v836_v10 = vpack.c.bf16 %v832_v11, %v832_v11  ;;  %v833_v16 = vmul.f32 %v1759_v13, %v1751_v59 }
 0x303   : > { %v837_v19 = vpack.c.bf16 %v833_v16, %v833_v16 }
 0x304   : > { %1627 = vmatmul.msk.bf16.vlgmr.msrb.gmra.mxu3 %vm693_vm1, %v836_v10 }
 0x305   : > { %1082 = vmatpush.bf16.msra.mxu3 %v1714_v56 }
 0x307   : > { %v819_v20 = vpop.xlane.xlu1 %818 }
 0x308   : > { %1760 = vrcp.f32 %v819_v20 }
 0x309   : > { %1083 = vmatpush.bf16.msra.mxu3 %v1713_v57 }
 0x30c   : > { %v903_v17 = vpop.permute.xlu0 %902 }
 0x30d   : > { %v908_v18 = vsel %vm843_vm2, %v903_v17, 0 }
 0x30e   : > { %917 = vmatpush.bf16.msra.mxu0 %v908_v18  ;;  %v1761_v23 = vpop.eup %1760 }
 0x30f   : > { %v831_v24 = vmul.f32 %v1761_v23, %v1753_v0 }
 0x311   : > { %1628 = vmatmul.msk.bf16.vlgmr.msra.gmra.mxu0 %vm693_vm1, %v837_v19  ;;  %v835_v27 = vpack.c.bf16 %v831_v24, %v831_v24 }
 0x314   : > { %v839_v21 = vpop.permute.xlu0 %838 }
 0x315   : > { %v845_v22 = vsel %vm843_vm2, %v839_v21, 0 }
 0x316   : > { %854 = vmatpush.bf16.msrb.mxu1 %v845_v22 }
 0x31a   : > { %970 = vmatpush.bf16.msra.mxu1 %v1710_v40 }
 0x31e   : > { %971 = vmatpush.bf16.msra.mxu1 %v1709_v41 }
 0x31f   : > { %v861_v25 = vpop.permute.xlu1 %860 }
 0x320   : > { %v866_v26 = vsel %vm843_vm2, %v861_v25, 0 }
 0x321   : > { %875 = vmatpush.bf16.msrb.mxu2 %v866_v26  ;;  %v2049_v26 = vld [vmem:[%s2174_s18] sm:$0x3f] }
 0x324   : > { %1626 = vmatmul.msk.bf16.vlgmr.msrb.gmra.mxu2 %vm693_vm1, %v835_v27 }
 0x34a   : > { %v816_v28 = vpop.xlane.xlu1 %815 }
 0x34b   : > { %1762 = vrcp.f32 %v816_v28 }
 0x34c   : > { %1764 = vrcp.f32 %v1804_v55 }
 0x351   : > { %v1763_v29 = vpop.eup %1762 }
 0x352   : > { %v830_v30 = vmul.f32 %v1763_v29, %v1755_v6  ;;  %v1712_v6 = vld [vmem:[%s2164_s8 + $0x8] sm:$0xff]  ;;  %v1007_v29 = vperm.slane %v2049_v26, 0 }
 0x353   : > { %1041 = vmatpush.bf16.msra.mxu2 %v1712_v6 }
 0x354   : > { %v834_v31 = vpack.c.bf16 %v830_v30, %v830_v30 }
 0x356   : > { %1625 = vmatmul.msk.bf16.vlgmr.msrb.gmra.mxu1 %vm693_vm1, %v834_v31  ;;  %v1009_v31 = vperm.slane %v2049_v26, 1 }
 0x357   : > { %1042 = vmatpush.bf16.msra.mxu2 %v1711_v7 }
 0x387   : > { %v898_v32 = vpop.f32.mrf.mxu3 }
 0x388   : > { %928 = vrot.lane.b32.xlu0 %v898_v32, %s2179_s3 }
 0x38e   : > { %v919_v33 = vpop.f32.mrf.mxu0 }
 0x38f   : > { %v900_v34 = vpop.f32.mrf.mxu3 }
 0x396   : > { %v921_v35 = vpop.f32.mrf.mxu0 }
 0x3a7   : > { %v877_v36 = vpop.f32.mrf.mxu2 }
 0x3a8   : > { %924 = vrot.lane.b32.xlu2 %v877_v36, %s2178_s21  ;;  %s2187_s21 = sld [smem:[#allocation3_spill]] }
 0x3ae   : > { %s624_s3 = scalar_lea.vmem %s2187_s21, %s1922_s2 }
 0x3af   : > { %v879_v37 = vpop.f32.mrf.mxu2  ;;  %v1706_v58 = vld [vmem:[%s624_s3] sm:$0xff] }
 0x3b0   : > { %932 = vrot.lane.b32.xlu2 %v919_v33, %s2177_s26  ;;  %1659 = vmatmul.msk.bf16.vlgmr.msra.gmra.mxu3 %vm658_vm0, %v1706_v58 }
 0x3d3   : > { %v856_v38 = vpop.f32.mrf.mxu1 }
 0x3db   : > { %v858_v39 = vpop.f32.mrf.mxu1 }
 0x3fa   : > { %v929_v44 = vpop.permute.xlu0 %928 }
 0x402   : > { %v925_v42 = vpop.permute.xlu2 %924 }
 0x403   : > { %v935_v43 = vsel %vm693_vm1, %v856_v38, %v925_v42 }
 0x404   : > { %v937_v46 = vsel %vm936_vm3, %v935_v43, %v929_v44  ;;  %v1744_v43 = vld [vmem:[%s2165_s9] ss:$0 sm:$0xff] }
 0x40a   : > { %v933_v45 = vpop.permute.xlu2 %932 }
 0x40b   : > { %v939_v47 = vsel %vm938_vm4, %v937_v46, %v933_v45 }
 0x40c   : > { %v940_v48 = vpack.c.bf16 %v939_v47, %v939_v47 }
 0x40e   : > { %1637 = vmatmul.msk.bf16.vlgmr.msra.gmra.mxu1 %vm658_vm0, %v940_v48 }
 0x433   : > { %v1085_v9 = vpop.f32.mrf.mxu3 }
 0x434   : > { %v1086_v14 = vadd.f32 %v1743_v8, %v1085_v9 }
 0x436   : > { %v1098_v10 = vpack.c.bf16 %v1086_v14, %v1086_v14 }
 0x438   : > { %1106 = vrot.lane.b32.xlu1 %v1098_v10, %s1798_s23  ;;  %v1114_v18 = vunpack.c.l.b16 %v1098_v10 }
 0x43b   : > { %v1087_v13 = vpop.f32.mrf.mxu3 }
 0x43c   : > { %v1088_v16 = vadd.f32 %v1743_v8, %v1087_v13 }
 0x43e   : > { %v1099_v17 = vpack.c.bf16 %v1088_v16, %v1088_v16 }
 0x440   : > { %v1115_v21 = vunpack.c.l.b16 %v1099_v17  ;;  %1112 = vrot.lane.b32.xlu1 %v1099_v17, %s1796_s1 }
 0x442   : > { %v2042_v23 = vpack.c.b16 %v1115_v21, %v1114_v18 }
 0x444   : > { %v1121_v25 = vsel %vm693_vm1, %v2042_v23, 0 }
 0x445   : > { %1130 = vmatpush.bf16.xpose.msrb.mxu0 %v1121_v25 }
 0x448   : > { %1102 = vrot.lane.b32.xlu1 %v1098_v10, %s1797_s22 }
 0x48b   : > { %v973_v50 = vpop.f32.mrf.mxu1 }
 0x48c   : > { %v974_v51 = vadd.f32 %v1742_v49, %v973_v50 }
 0x48e   : > { %v977_v52 = vadd.f32 %v974_v51, %v1932_v2  ;;  %v1765_v2 = vpop.eup %1764 }
 0x48f   : > { %v982_v59 = vmul.f32 32.0, %v1765_v2  ;;  %vm986_vm5 = vweird.f32 %v1765_v2 }
 0x490   : > { %v978_v53 = vsel %vm658_vm0, %v977_v52, 0.0 }
 0x491   : > { %979 = vadd.xlane.f32.xlu0 %v978_v53  ;;  %v983_v60 = vsub.f32 1.0, %v982_v59 }
 0x493   : > { %v975_v54 = vpop.f32.mrf.mxu1  ;;  %v984_v61 = vmul.f32 %v1765_v2, %v983_v60 }
 0x495   : > { %v985_v62 = vadd.f32 %v1765_v2, %v984_v61 }
 0x497   : > { %v2024_v63 = vsel %vm986_vm5, %v1765_v2, %v985_v62 }
 0x4a5   : > { %1108 = vrot.lane.b32.xlu0 %v1099_v17, %s1798_s23 }
 0x4aa   : > { %v1107_v36 = vpop.permute.xlu1 %1106 }
 0x4ab   : > { %v1158_v51 = vunpack.c.l.b16 %v1107_v36 }
 0x4ad   : > { %1104 = vrot.lane.b32.xlu0 %v1099_v17, %s1797_s22 }
 0x4b2   : > { %v1113_v39 = vpop.permute.xlu1 %1112 }
 0x4b3   : > { %v1181_v40 = vunpack.c.l.b16 %v1113_v39 }
 0x4ba   : > { %v1103_v49 = vpop.permute.xlu1 %1102 }
 0x4bb   : > { %v1136_v53 = vunpack.c.l.b16 %v1103_v49 }
 0x504   : > { %v980_v0 = vpop.xlane.xlu0 %979 }
 0x505   : > { %v988_v1 = vmul.f32 %v2024_v63, %v980_v0 }
 0x507   : > { %v989_v3 = vsub.f32 %v977_v52, %v988_v1 }
 0x509   : > { %v990_v4 = vmul.f32 %v989_v3, %v989_v3 }
 0x50b   : > { %v991_v5 = vsel %vm658_vm0, %v990_v4, 0.0 }
 0x50c   : > { %992 = vadd.xlane.f32.xlu2 %v991_v5 }
 0x517   : > { %v1109_v48 = vpop.permute.xlu0 %1108 }
 0x518   : > { %v1159_v52 = vunpack.c.l.b16 %v1109_v48 }
 0x51a   : > { %v1160_v55 = vpack.c.b16 %v1159_v52, %v1158_v51 }
 0x51c   : > { %v1165_v2 = vsel %vm693_vm1, %v1160_v55, 0 }
 0x51d   : > { %1174 = vmatpush.bf16.xpose.msrb.mxu2 %v1165_v2 }
 0x51f   : > { %v1105_v50 = vpop.permute.xlu0 %1104 }
 0x520   : > { %v1137_v54 = vunpack.c.l.b16 %v1105_v50 }
 0x522   : > { %v1138_v56 = vpack.c.b16 %v1137_v54, %v1136_v53 }
 0x524   : > { %1110 = vrot.lane.b32.xlu2 %v1098_v10, %s1796_s1  ;;  %v1143_v57 = vsel %vm693_vm1, %v1138_v56, 0 }
 0x525   : > { %1152 = vmatpush.bf16.xpose.msrb.mxu1 %v1143_v57 }
 0x57f   : > { %v993_v11 = vpop.xlane.xlu2 %992 }
 0x580   : > { %v994_v12 = vmul.f32 %v993_v11, %v2024_v63 }
 0x582   : > { %v995_v15 = vadd.f32 1e-05, %v994_v12 }
 0x584   : > { %1766 = vrsqrt.f32 %v995_v15  ;;  %vm1002_vm7 = vweird.f32 %v995_v15 }
 0x587   : > { %v1111_v37 = vpop.permute.xlu2 %1110 }
 0x588   : > { %v1180_v38 = vunpack.c.l.b16 %v1111_v37 }
 0x58a   : > { %v1767_v19 = vpop.eup %1766  ;;  %v2060_v41 = vpack.c.b16 %v1181_v40, %v1180_v38 }
 0x58b   : > { %v997_v20 = vmul.f32 %v1767_v19, %v995_v15  ;;  %vm1003_vm6 = vweird.f32 %v1767_v19 }
 0x58c   : > { %vm1004_vm8 = vmor %vm1002_vm7, %vm1003_vm6  ;;  %v1187_v42 = vsel %vm693_vm1, %v2060_v41, 0 }
 0x58d   : > { %v998_v22 = vmul.f32 %v1767_v19, %v997_v20  ;;  %1196 = vmatpush.bf16.xpose.msrb.mxu3 %v1187_v42 }
 0x58f   : > { %v999_v24 = vmul.f32 0.5, %v998_v22 }
 0x591   : > { %v1000_v27 = vsub.f32 1.5, %v999_v24 }
 0x593   : > { %v1001_v28 = vmul.f32 %v1767_v19, %v1000_v27 }
 0x595   : > { %v1005_v30 = vsel %vm1004_vm8, %v1767_v19, %v1001_v28 }
 0x596   : > { %v1006_v32 = vmul.f32 %v1005_v30, %v989_v3 }
 0x598   : > { %v1008_v33 = vmul.f32 %v1007_v29, %v1006_v32 }
 0x59a   : > { %v2055_v34 = vadd.f32 %v1009_v31, %v1008_v33 }
 0x59c   : > { %v1011_v35 = vpack.c.bf16 %v2055_v34, %v2055_v34 }
 0x59e   : > { %1646 = vmatmul.msk.bf16.vlgmr.msra.gmra.mxu2 %vm658_vm0, %v1011_v35 }
 0x621   : > { %v1044_v44 = vpop.f32.mrf.mxu2 }
 0x622   : > { %v1045_v45 = vadd.f32 %v1744_v43, %v1044_v44 }
 0x624   : > { %v1090_v46 = vpack.c.bf16 %v1045_v45, %v1045_v45 }
 0x626   : > { %1092 = vrot.lane.b32.xlu0 %v1090_v46, %s1797_s22  ;;  %1096 = vrot.lane.b32.xlu2 %v1090_v46, %s1796_s1  ;;  %s2188_s1 = smov 16   ;;  %s2189_s22 = smov 8  }
 0x627   : > { %1094 = vrot.lane.b32.xlu1 %v1090_v46, %s1798_s23  ;;  %1660 = vmatmul.msk.bf16.vlgmr.msrb.gmra.mxu0 %vm693_vm1, %v1090_v46  ;;  %s2190_s23 = smov 24  }
 0x629   : > { %v1046_v47 = vpop.f32.mrf.mxu2 }
 0x680   : > { %v1097_v58 = vpop.permute.xlu2 %1096 }
 0x681   : > { %1663 = vmatmul.msk.bf16.vlgmr.msrb.gmra.mxu3 %vm693_vm1, %v1097_v58 }
 0x698   : > { %v1093_v59 = vpop.permute.xlu0 %1092 }
 0x699   : > { %v1095_v60 = vpop.permute.xlu1 %1094  ;;  %1661 = vmatmul.msk.bf16.vlgmr.msrb.gmra.mxu1 %vm693_vm1, %v1093_v59 }
 0x69a   : > { %1662 = vmatmul.msk.bf16.vlgmr.msrb.gmra.mxu2 %vm693_vm1, %v1095_v60 }
 0x6a4   : > { %v1132_v61 = vpop.f32.mrf.mxu0 }
 0x6a5   : > { %v1202_v14 = vmul.f32 0.35355338, %v1132_v61 }
 0x6a7   : > { %v1206_v10 = vsel %vm936_vm3, %v1202_v14, -inf }
 0x6ac   : > { %v1134_v62 = vpop.f32.mrf.mxu0 }
 0x704   : > { %v1198_v0 = vpop.f32.mrf.mxu3 }
 0x705   : > { %v1205_v1 = vmul.f32 0.35355338, %v1198_v0 }
 0x707   : > { %v1215_v3 = vsel %vm936_vm3, %v1205_v1, -inf }
 0x708   : > { %1216 = vmax.xlane.f32.xlu2 %v1215_v3  ;;  %v1715_v3 = vld [vmem:[%s2168_s12] sm:$0xff] }
 0x70c   : > { %v1200_v4 = vpop.f32.mrf.mxu3 }
 0x716   : > { %v1154_v5 = vpop.f32.mrf.mxu1 }
 0x717   : > { %v1203_v6 = vmul.f32 0.35355338, %v1154_v5 }
 0x719   : > { %v1209_v7 = vsel %vm936_vm3, %v1203_v6, -inf }
 0x71a   : > { %1210 = vmax.xlane.f32.xlu0 %v1209_v7 }
 0x71d   : > { %v1176_v8 = vpop.f32.mrf.mxu2 }
 0x71e   : > { %v1204_v9 = vmul.f32 0.35355338, %v1176_v8  ;;  %v1156_v11 = vpop.f32.mrf.mxu1 }
 0x720   : > { %v1212_v12 = vsel %vm936_vm3, %v1204_v9, -inf }
 0x721   : > { %1213 = vmax.xlane.f32.xlu1 %v1212_v12  ;;  %v1745_v12 = vld [vmem:[%s2169_s13] ss:$0 sm:$0xff] }
 0x725   : > { %v1178_v15 = vpop.f32.mrf.mxu2 }
 0x729   : > { %1207 = vmax.xlane.f32.xlu1 %v1206_v10 }
 0x77b   : > { %v1217_v13 = vpop.xlane.xlu2 %1216 }
 0x77c   : > { %v1221_v16 = vsub.f32 %v1205_v1, %v1217_v13  ;;  %v1716_v1 = vld [vmem:[%s2168_s12 + $0x8] sm:$0xff] }
 0x77e   : > { %v1228_v17 = vmul.f32 1.442695, %v1221_v16 }
 0x780   : > { %1768 = vpow2.f32 %v1228_v17 }
 0x786   : > { %v1769_v18 = vpop.eup %1768 }
 0x787   : > { %v1239_v19 = vsel %vm936_vm3, %v1769_v18, 0.0 }
 0x788   : > { %1240 = vadd.xlane.f32.xlu0 %v1239_v19 }
 0x78d   : > { %v1211_v20 = vpop.xlane.xlu0 %1210 }
 0x78e   : > { %v1219_v21 = vsub.f32 %v1203_v6, %v1211_v20 }
 0x790   : > { %v1224_v22 = vmul.f32 1.442695, %v1219_v21 }
 0x792   : > { %1770 = vpow2.f32 %v1224_v22  ;;  %v1718_v22 = vld [vmem:[%s2170_s14 + $0x8] sm:$0xff] }
 0x794   : > { %v1214_v24 = vpop.xlane.xlu1 %1213 }
 0x795   : > { %v1220_v25 = vsub.f32 %v1204_v9, %v1214_v24  ;;  %v1722_v24 = vld [vmem:[%s2172_s16 + $0x18] sm:$0xff] }
 0x797   : > { %v1226_v27 = vmul.f32 1.442695, %v1220_v25 }
 0x798   : > { %v1771_v28 = vpop.eup %1770 }
 0x799   : > { %1772 = vpow2.f32 %v1226_v27  ;;  %v1233_v29 = vsel %vm936_vm3, %v1771_v28, 0.0 }
 0x79a   : > { %1234 = vadd.xlane.f32.xlu1 %v1233_v29 }
 0x79c   : > { %1311 = vrot.lane.b32.xlu0 %v2060_v41, %s1799_s24  ;;  %v1208_v32 = vpop.xlane.xlu1 %1207 }
 0x79d   : > { %v1218_v33 = vsub.f32 %v1202_v14, %v1208_v32 }
 0x79f   : > { %v1773_v30 = vpop.eup %1772  ;;  %v1222_v35 = vmul.f32 1.442695, %v1218_v33 }
 0x7a0   : > { %v1236_v31 = vsel %vm936_vm3, %v1773_v30, 0.0 }
 0x7a1   : > { %1237 = vadd.xlane.f32.xlu2 %v1236_v31  ;;  %1774 = vpow2.f32 %v1222_v35 }
 0x7a7   : > { %v1775_v36 = vpop.eup %1774 }
 0x7a8   : > { %v1230_v37 = vsel %vm936_vm3, %v1775_v36, 0.0 }
 0x7b3   : > { %1273 = vrot.lane.b32.xlu1 %v1138_v56, %s1799_s24 }
 0x7b9   : > { %1292 = vrot.lane.b32.xlu2 %v1160_v55, %s1799_s24 }
 0x7c1   : > { %1254 = vrot.lane.b32.xlu2 %v2042_v23, %s1799_s24  ;;  %s631_s24 = scalar_lea.vmem %s2175_s19, %s1922_s2 }
 0x7c6   : > { %1231 = vadd.xlane.f32.xlu0 %v1230_v37  ;;  %v1405_v37 = vperm.slane %v2049_v26, 2 }
 0x7fb   : > { %v1241_v38 = vpop.xlane.xlu0 %1240 }
 0x7fc   : > { %1776 = vrcp.f32 %v1241_v38 }
 0x802   : > { %v1777_v39 = vpop.eup %1776 }
 0x803   : > { %v1249_v40 = vmul.f32 %v1777_v39, %v1769_v18  ;;  %v1407_v39 = vperm.slane %v2049_v26, 3 }
 0x805   : > { %v1253_v42 = vpack.c.bf16 %v1249_v40, %v1249_v40 }
 0x80d   : > { %v1235_v44 = vpop.xlane.xlu1 %1234 }
 0x80e   : > { %v1312_v41 = vpop.permute.xlu0 %1311 }
 0x80f   : > { %1324 = vmatpush.bf16.msra.mxu3 %v1312_v41 }
 0x812   : > { %1667 = vmatmul.msk.bf16.vlgmr.msra.gmra.mxu3 %vm936_vm3, %v1253_v42 }
 0x814   : > { %v1238_v43 = vpop.xlane.xlu2 %1237 }
 0x815   : > { %1778 = vrcp.f32 %v1238_v43 }
 0x816   : > { %1780 = vrcp.f32 %v1235_v44  ;;  %v1720_v44 = vld [vmem:[%s2172_s16 + $0x8] sm:$0xff] }
 0x81b   : > { %v1779_v45 = vpop.eup %1778 }
 0x81c   : > { %v1248_v46 = vmul.f32 %v1779_v45, %v1773_v30  ;;  %v1293_v23 = vpop.permute.xlu2 %1292  ;;  %v1781_v48 = vpop.eup %1780  ;;  %v1719_v45 = vld [vmem:[%s2172_s16] sm:$0xff] }
 0x81d   : > { %1305 = vmatpush.bf16.msra.mxu2 %v1293_v23  ;;  %v1247_v49 = vmul.f32 %v1781_v48, %v1771_v28  ;;  %v1721_v28 = vld [vmem:[%s2172_s16 + $0x10] sm:$0xff] }
 0x81e   : > { %v1252_v47 = vpack.c.bf16 %v1248_v46, %v1248_v46  ;;  %v1746_v46 = vld [vmem:[%s2171_s15] ss:$0 sm:$0xff] }
 0x81f   : > { %v1251_v52 = vpack.c.bf16 %v1247_v49, %v1247_v49 }
 0x820   : > { %1666 = vmatmul.msk.bf16.vlgmr.msra.gmra.mxu2 %vm936_vm3, %v1252_v47 }
 0x821   : > { %1492 = vmatpush.bf16.msrb.mxu2 %v1722_v24 }
 0x824   : > { %v1255_v50 = vpop.permute.xlu2 %1254 }
 0x825   : > { %1267 = vmatpush.bf16.msra.mxu0 %v1255_v50  ;;  %v1274_v51 = vpop.permute.xlu1 %1273  ;;  %1493 = vmatpush.bf16.msrb.mxu2 %v1721_v28 }
 0x826   : > { %1286 = vmatpush.bf16.msra.mxu1 %v1274_v51  ;;  %v1747_v51 = vld [vmem:[%s2173_s17] ss:$0 sm:$0xff] }
 0x829   : > { %1665 = vmatmul.msk.bf16.vlgmr.msra.gmra.mxu1 %vm936_vm3, %v1251_v52  ;;  %1375 = vmatpush.bf16.msrb.mxu0 %v1716_v1 }
 0x82a   : > { %1439 = vmatpush.bf16.msrb.mxu1 %v1718_v22  ;;  %1494 = vmatpush.bf16.msrb.mxu2 %v1720_v44 }
 0x82d   : > { %1376 = vmatpush.bf16.msrb.mxu0 %v1715_v3 }
 0x82e   : > { %1495 = vmatpush.bf16.msrb.mxu2 %v1719_v45 }
 0x839   : > { %v1232_v53 = vpop.xlane.xlu0 %1231 }
 0x83a   : > { %1782 = vrcp.f32 %v1232_v53 }
 0x840   : > { %v1783_v54 = vpop.eup %1782 }
 0x841   : > { %v1246_v55 = vmul.f32 %v1783_v54, %v1775_v36 }
 0x843   : > { %v1250_v56 = vpack.c.bf16 %v1246_v55, %v1246_v55 }
 0x845   : > { %1664 = vmatmul.msk.bf16.vlgmr.msra.gmra.mxu0 %vm936_vm3, %v1250_v56 }
 0x895   : > { %v1326_v57 = vpop.f32.mrf.mxu3 }
 0x89d   : > { %v1328_v2 = vpop.f32.mrf.mxu3 }
 0x8a3   : > { %v1307_v58 = vpop.f32.mrf.mxu2 }
 0x8a4   : > { %1335 = vrot.lane.b32.xlu2 %v1307_v58, %s2188_s1 }
 0x8a6   : > { %v1288_v59 = vpop.f32.mrf.mxu1 }
 0x8a7   : > { %1331 = vrot.lane.b32.xlu1 %v1288_v59, %s2189_s22 }
 0x8ab   : > { %v1309_v60 = vpop.f32.mrf.mxu2 }
 0x8ae   : > { %v1290_v61 = vpop.f32.mrf.mxu1 }
 0x8af   : > { %1339 = vrot.lane.b32.xlu1 %v1326_v57, %s2190_s23 }
 0x8c2   : > { %v1269_v62 = vpop.f32.mrf.mxu0 }
 0x8ca   : > { %v1271_v0 = vpop.f32.mrf.mxu0 }
 0x8fe   : > { %v1336_v6 = vpop.permute.xlu2 %1335 }
 0x919   : > { %v1332_v4 = vpop.permute.xlu1 %1331 }
 0x91a   : > { %v1342_v5 = vsel %vm693_vm1, %v1269_v62, %v1332_v4 }
 0x91b   : > { %v1343_v7 = vsel %vm936_vm3, %v1342_v5, %v1336_v6 }
 0x921   : > { %v1340_v8 = vpop.permute.xlu1 %1339 }
 0x922   : > { %v1344_v9 = vsel %vm938_vm4, %v1343_v7, %v1340_v8  ;;  %v1524_v8 = vperm.slane %v2049_v26, 4 }
 0x923   : > { %v1345_v11 = vpack.c.bf16 %v1344_v9, %v1344_v9 }
 0x925   : > { %1676 = vmatmul.msk.bf16.vlgmr.msrb.gmra.mxu0 %vm658_vm0, %v1345_v11  ;;  %v1526_v11 = vperm.slane %v2049_v26, 5 }
 0x9a2   : > { %v1378_v14 = vpop.f32.mrf.mxu0 }
 0x9a3   : > { %v1379_v15 = vadd.f32 %v1745_v12, %v1378_v14 }
 0x9a5   : > { %v1382_v10 = vadd.f32 %v1379_v15, %v2055_v34  ;;  %v1717_v34 = vld [vmem:[%s2170_s14] sm:$0xff] }
 0x9a6   : > { %1440 = vmatpush.bf16.msrb.mxu1 %v1717_v34 }
 0x9a7   : > { %v1383_v13 = vsel %vm658_vm0, %v1382_v10, 0.0 }
 0x9a8   : > { %1384 = vadd.xlane.f32.xlu2 %v1383_v13 }
 0x9aa   : > { %v1380_v16 = vpop.f32.mrf.mxu0 }
 0xa1b   : > { %v1385_v17 = vpop.xlane.xlu2 %1384 }
 0xa1c   : > { %v1386_v18 = vmul.f32 %v1385_v17, %v2024_v63 }
 0xa1e   : > { %v1387_v19 = vsub.f32 %v1382_v10, %v1386_v18 }
 0xa20   : > { %v1388_v20 = vmul.f32 %v1387_v19, %v1387_v19 }
 0xa22   : > { %v1389_v21 = vsel %vm658_vm0, %v1388_v20, 0.0 }
 0xa23   : > { %1390 = vadd.xlane.f32.xlu1 %v1389_v21 }
 0xa96   : > { %v1391_v25 = vpop.xlane.xlu1 %1390 }
 0xa97   : > { %v1392_v27 = vmul.f32 %v1391_v25, %v2024_v63 }
 0xa99   : > { %v1393_v29 = vadd.f32 1e-05, %v1392_v27 }
 0xa9b   : > { %1784 = vrsqrt.f32 %v1393_v29  ;;  %vm1400_vm10 = vweird.f32 %v1393_v29 }
 0xaa1   : > { %v1785_v30 = vpop.eup %1784 }
 0xaa2   : > { %v1395_v31 = vmul.f32 %v1785_v30, %v1393_v29  ;;  %vm1401_vm9 = vweird.f32 %v1785_v30 }
 0xaa3   : > { %vm1402_vm11 = vmor %vm1400_vm10, %vm1401_vm9 }
 0xaa4   : > { %v1396_v32 = vmul.f32 %v1785_v30, %v1395_v31 }
 0xaa6   : > { %v1397_v33 = vmul.f32 0.5, %v1396_v32 }
 0xaa8   : > { %v1398_v35 = vsub.f32 1.5, %v1397_v33 }
 0xaaa   : > { %v1399_v36 = vmul.f32 %v1785_v30, %v1398_v35 }
 0xaac   : > { %v1403_v38 = vsel %vm1402_vm11, %v1785_v30, %v1399_v36 }
 0xaad   : > { %v1404_v40 = vmul.f32 %v1403_v38, %v1387_v19 }
 0xaaf   : > { %v1406_v41 = vmul.f32 %v1405_v37, %v1404_v40 }
 0xab1   : > { %v1408_v42 = vadd.f32 %v1407_v39, %v1406_v41 }
 0xab3   : > { %v1409_v43 = vpack.c.bf16 %v1408_v42, %v1408_v42 }
 0xab5   : > { %1685 = vmatmul.msk.bf16.vlgmr.msrb.gmra.mxu1 %vm658_vm0, %v1409_v43 }
 0xb32   : > { %v1442_v23 = vpop.f32.mrf.mxu1 }
 0xb33   : > { %v1443_v47 = vadd.f32 %v1746_v46, %v1442_v23 }
 0xb35   : > { %v1446_v48 = vmax.f32 %v1443_v47, 0.0 }
 0xb37   : > { %v1447_v49 = vpack.c.bf16 %v1446_v48, %v1446_v48 }
 0xb39   : > { %1702 = vmatmul.msk.bf16.vlgmr.msrb.gmra.mxu2 %vm1484_vm12, %v1447_v49 }
 0xb3a   : > { %v1444_v50 = vpop.f32.mrf.mxu1 }
 0xbbc   : > { %v1497_v52 = vpop.f32.mrf.mxu2 }
 0xbbd   : > { %v1498_v53 = vadd.f32 %v1747_v51, %v1497_v52 }
 0xbbf   : > { %v1501_v54 = vadd.f32 %v1498_v53, %v1408_v42 }
 0xbc1   : > { %v1502_v55 = vsel %vm658_vm0, %v1501_v54, 0.0 }
 0xbc2   : > { %1503 = vadd.xlane.f32.xlu0 %v1502_v55 }
 0xbc4   : > { %v1499_v56 = vpop.f32.mrf.mxu2 }
 0xc35   : > { %v1504_v57 = vpop.xlane.xlu0 %1503 }
 0xc36   : > { %v1505_v2 = vmul.f32 %v1504_v57, %v2024_v63 }
 0xc38   : > { %v1506_v58 = vsub.f32 %v1501_v54, %v1505_v2 }
 0xc3a   : > { %v1507_v59 = vmul.f32 %v1506_v58, %v1506_v58 }
 0xc3c   : > { %v1508_v60 = vsel %vm658_vm0, %v1507_v59, 0.0 }
 0xc3d   : > { %1509 = vadd.xlane.f32.xlu0 %v1508_v60 }
 0xcb0   : > { %v1510_v61 = vpop.xlane.xlu0 %1509 }
 0xcb1   : > { %v1511_v62 = vmul.f32 %v1510_v61, %v2024_v63 }
 0xcb3   : > { %v1512_v0 = vadd.f32 1e-05, %v1511_v62 }
 0xcb5   : > { %1786 = vrsqrt.f32 %v1512_v0  ;;  %vm1519_vm14 = vweird.f32 %v1512_v0 }
 0xcbb   : > { %v1787_v1 = vpop.eup %1786 }
 0xcbc   : > { %v1514_v3 = vmul.f32 %v1787_v1, %v1512_v0  ;;  %vm1520_vm13 = vweird.f32 %v1787_v1 }
 0xcbd   : > { %vm1521_vm15 = vmor %vm1519_vm14, %vm1520_vm13 }
 0xcbe   : > { %v1515_v4 = vmul.f32 %v1787_v1, %v1514_v3 }
 0xcc0   : > { %v1516_v5 = vmul.f32 0.5, %v1515_v4 }
 0xcc2   : > { %v1517_v6 = vsub.f32 1.5, %v1516_v5 }
 0xcc4   : > { %v1518_v7 = vmul.f32 %v1787_v1, %v1517_v6 }
 0xcc6   : > { %v1522_v9 = vsel %vm1521_vm15, %v1787_v1, %v1518_v7 }
 0xcc7   : > { %v1523_v12 = vmul.f32 %v1522_v9, %v1506_v58 }
 0xcc9   : > { %v1525_v14 = vmul.f32 %v1524_v8, %v1523_v12 }
 0xccb   : > { %v1527_v63 = vadd.f32 %v1526_v11, %v1525_v14 }
 0xccd   : > { %1528 = vst.msk [vmem:[%s631_s24] sm:$0xff] %vm658_vm0, %v1527_v63 }
 0xcce PF: > { %s29_s0 = sadd.s32 1, %s1794_s0  }
 0xccf   : > { %p26_p4 = scmp.ge.s32.totalorder %s29_s0, 4  }
 0xcd1   :  { %28 = sbr.rel (!%p26_p4) target bundleno = 5 (0x5), region = 132 }

</bundles_post_ra>
